<compile_context>
chip_gen: v5e
topology: v5e:2x2
jax: 0.10.0
libtpu: 0.0.40
codegen_flags: <defaults>
</compile_context>

<pallas_src>
import functools

import jax
import jax.numpy as jnp
from jax import lax
from jax.experimental import pallas as pl
from jax.experimental.pallas import tpu as pltpu


def _round_up(x, m):
    return ((x + m - 1) // m) * m


# ----------------------------------------------------------------------------
# Fused kernel factory.
#   lens_ref : (Bp, 1)    int32  per-row sequence length (0 for padded rows)
#   x_ref    : (T*Bp, E)  bf16   time-major, batch-padded, flattened embeddings
#   per layer l: wih (D_in, 4H) bf16, whh (H, 4H) bf16, b (1, 4H) f32
#                (b = b_ih + b_hh; gate columns already ordered i, f, o, g)
#   wfc_ref  : (H, O_pad) bf16   fc weight, lane-padded to 128
#   bfc_ref  : (1, O_pad) f32
#   out_ref  : (Bp, O_pad) f32   sigmoid(fc(last_hidden)), lane-dense store
# ----------------------------------------------------------------------------
def _make_fused_kernel(n_layers, T, Bp, H, has_hseq):

    unroll = True if T <= 32 else 4

    def kernel(lens_ref, x_ref, *rest):
        layer_refs = rest[: 3 * n_layers]
        wfc_ref, bfc_ref, out_ref = rest[3 * n_layers: 3 * n_layers + 3]
        scratch = rest[3 * n_layers + 3:]
        xproj_sc = scratch[0]                                 # (T*Bp, 4H) f32
        hseq_sc = scratch[1] if has_hseq else None            # (T*Bp, H) bf16

        lens = lens_ref[...]                                  # (Bp, 1) int32
        zeros_bh = jnp.zeros((Bp, H), jnp.float32)
        last = zeros_bh

        for layer in range(n_layers):
            wih_ref = layer_refs[3 * layer + 0]
            whh_ref = layer_refs[3 * layer + 1]
            b_ref = layer_refs[3 * layer + 2]
            is_last = layer == n_layers - 1

            # --- Hoisted input projection: one big MXU matmul per layer, bias
            #     folded in once here instead of per timestep. ----------------
            if layer == 0:
                x_in = x_ref[...]                             # (T*Bp, E) bf16
            else:
                x_in = hseq_sc[...]                           # (T*Bp, H) bf16
            xproj_sc[...] = (
                jnp.dot(x_in, wih_ref[...], preferred_element_type=jnp.float32)
                + b_ref[...]
            )                                                 # (T*Bp, 4H) f32

            whh = whh_ref[...]                                # resident (H,4H) bf16

            # --- Serial recurrence: only h @ W_hh + gate math per step. ------
            def step(t, carry, is_last=is_last, whh=whh):
                h, c, last_h = carry
                row = pl.multiple_of(t * Bp, 8)               # sublane-aligned
                gates = xproj_sc[pl.ds(row, Bp), :] + jnp.dot(
                    h.astype(jnp.bfloat16), whh,
                    preferred_element_type=jnp.float32)       # (Bp, 4H) f32
                # Gate layout is (i, f, o | g): one sigmoid pass, one tanh pass.
                sig = jax.nn.sigmoid(gates[:, : 3 * H])
                g_g = jnp.tanh(gates[:, 3 * H:])
                i_g = sig[:, :H]
                f_g = sig[:, H: 2 * H]
                o_g = sig[:, 2 * H:]
                c_new = f_g * c + i_g * g_g
                h_new = o_g * jnp.tanh(c_new)
                if is_last:
                    # Masked "take h at t == len - 1": replaces a (T,B,H)
                    # writeback + per-row gather; safe for len == 0.
                    take = lens == (t + 1)                    # (Bp, 1) bool
                    last_h = jnp.where(take, h_new, last_h)
                else:
                    # Next layer's input; store is off the critical path.
                    hseq_sc[pl.ds(row, Bp), :] = h_new.astype(hseq_sc.dtype)
                return (h_new, c_new, last_h)

            _, _, last = lax.fori_loop(
                0, T, step, (zeros_bh, zeros_bh, last), unroll=unroll)

        # --- fused FC + sigmoid; O is lane-padded so the store is lane-dense.
        logits = jnp.dot(last.astype(jnp.bfloat16), wfc_ref[...],
                         preferred_element_type=jnp.float32) + bfc_ref[...]
        out_ref[...] = jax.nn.sigmoid(logits)

    return kernel


def fused_lstm_fc(lens_v, x_flat, layer_params, wfc_pad, bfc_pad, *, T, Bp, H):
    n_layers = len(layer_params)
    o_pad = wfc_pad.shape[-1]
    flat_weights = []
    for lp in layer_params:
        flat_weights += [lp["wih_t"], lp["whh_t"], lp["b"]]
    n_in = 2 + 3 * n_layers + 2

    has_hseq = n_layers > 1
    scratch_shapes = [pltpu.VMEM((T * Bp, 4 * H), jnp.float32)]   # hoisted x-proj
    if has_hseq:
        scratch_shapes.append(pltpu.VMEM((T * Bp, H), jnp.bfloat16))  # layer->layer

    return pl.pallas_call(
        _make_fused_kernel(n_layers, T, Bp, H, has_hseq),
        out_shape=jax.ShapeDtypeStruct((Bp, o_pad), jnp.float32),
        in_specs=[pl.BlockSpec(memory_space=pltpu.MemorySpace.VMEM)] * n_in,
        out_specs=pl.BlockSpec(memory_space=pltpu.MemorySpace.VMEM),
        scratch_shapes=scratch_shapes,
    )(lens_v, x_flat, *flat_weights, wfc_pad, bfc_pad)


# ----------------------------------------------------------------------------
# Parameter packing: PyTorch-layout LSTM weights -> kernel layout
#   (transpose to (D, 4H), reorder gate columns i,f,g,o -> i,f,o,g, bf16;
#    biases summed and kept f32).
# ----------------------------------------------------------------------------
def _reorder_gate_cols(w, H):
    i, f, g, o = (w[..., k * H:(k + 1) * H] for k in range(4))
    return jnp.concatenate([i, f, o, g], axis=-1)


def pack_lstm_layer(w_ih, w_hh, b_ih, b_hh):
    H = w_hh.shape[1]
    wih_t = _reorder_gate_cols(w_ih.T, H).astype(jnp.bfloat16)    # (D_in, 4H)
    whh_t = _reorder_gate_cols(w_hh.T, H).astype(jnp.bfloat16)    # (H, 4H)
    b = _reorder_gate_cols((b_ih + b_hh).reshape(1, -1), H)       # (1, 4H) f32
    return {"wih_t": wih_t, "whh_t": whh_t, "b": b}


# ----------------------------------------------------------------------------
# Parameters (deterministic demo init, matching the PyTorch module's shapes).
# ----------------------------------------------------------------------------
def init_params(key, vocab_size, embedding_dim, hidden_dim, n_layers, output_size):
    keys = jax.random.split(key, 2 + n_layers)
    k_emb, k_fc = keys[0], keys[1]
    o_pad = _round_up(max(output_size, 1), 128)

    wfc = 0.1 * jax.random.normal(k_fc, (hidden_dim, output_size), jnp.float32)
    wfc_pad = jnp.zeros((hidden_dim, o_pad), jnp.float32).at[:, :output_size].set(wfc)

    params = {
        "embedding": 0.1 * jax.random.normal(
            k_emb, (vocab_size, embedding_dim), jnp.float32),
        "wfc_pad": wfc_pad.astype(jnp.bfloat16),
        "bfc_pad": jnp.zeros((1, o_pad), jnp.float32),
        "lstm": [],
    }
    for layer in range(n_layers):
        d_in = embedding_dim if layer == 0 else hidden_dim
        k0, k1, k2, k3 = jax.random.split(keys[2 + layer], 4)
        # PyTorch layout: (4H, D_in) / (4H, H) rows ordered [i; f; g; o].
        w_ih = 0.1 * jax.random.normal(k0, (4 * hidden_dim, d_in), jnp.float32)
        w_hh = 0.1 * jax.random.normal(k1, (4 * hidden_dim, hidden_dim), jnp.float32)
        b_ih = 0.05 * jax.random.normal(k2, (4 * hidden_dim,), jnp.float32)
        b_hh = 0.05 * jax.random.normal(k3, (4 * hidden_dim,), jnp.float32)
        params["lstm"].append(pack_lstm_layer(w_ih, w_hh, b_ih, b_hh))
    return params


# ----------------------------------------------------------------------------
# Forward pass (mirrors ModelLSTM.forward, eval mode).
# ----------------------------------------------------------------------------
@functools.partial(jax.jit, static_argnums=(3,))
def model_lstm_forward(params, x_tokens, seq_lengths, output_size):
    B, T = x_tokens.shape
    E = params["embedding"].shape[1]
    H = params["lstm"][0]["whh_t"].shape[0]
    Bp = _round_up(B, 8)                         # sublane-aligned batch tile

    # Embedding lookup (glue gather; the hot path is the fused kernel below).
    emb = params["embedding"][x_tokens]                       # (B, T, E) f32
    x_tm = jnp.transpose(emb, (1, 0, 2))                      # (T, B, E) time-major
    x_tm = jnp.pad(x_tm, ((0, 0), (0, Bp - B), (0, 0)))       # pad batch rows
    x_flat = x_tm.reshape(T * Bp, E).astype(jnp.bfloat16)     # flat, matmul-ready

    lens_v = jnp.pad(seq_lengths.astype(jnp.int32), (0, Bp - B)).reshape(Bp, 1)

    out_pad = fused_lstm_fc(lens_v, x_flat, params["lstm"],
                            params["wfc_pad"], params["bfc_pad"],
                            T=T, Bp=Bp, H=H)                  # (Bp, O_pad)

    # TODO(synk): nn.Dropout / intra-LSTM dropout are identity in eval mode.
    out = out_pad[:B, :output_size]
    return jnp.squeeze(out)                                   # matches torch .squeeze()


if __name__ == "__main__":
    # Small shapes consistent with the module.
    VOCAB, EMB, HID, LAYERS, OUT = 50, 32, 32, 2, 1
    B, T = 2, 8

    key = jax.random.PRNGKey(0)
    k_par, k_tok = jax.random.split(key)
    params = init_params(k_par, VOCAB, EMB, HID, LAYERS, OUT)

    x_tokens = jax.random.randint(k_tok, (B, T), 0, VOCAB, dtype=jnp.int32)
    # pack_padded_sequence (enforce_sorted=True default) expects descending lengths.
    seq_lengths = jnp.array([8, 5], dtype=jnp.int32)

    out = model_lstm_forward(params, x_tokens, seq_lengths, OUT)
    out = jax.block_until_ready(out)
    assert out.shape == (B,), out.shape
    print("KERNEL_OK")
</pallas_src>

<mosaic_0001>
module attributes {stable_mosaic.version = 11 : i64} {
  func.func @kernel(%arg0: memref<8x1xi32, #tpu.memory_space<vmem>>, %arg1: memref<64x32xbf16, #tpu.memory_space<vmem>>, %arg2: memref<32x128xbf16, #tpu.memory_space<vmem>>, %arg3: memref<32x128xbf16, #tpu.memory_space<vmem>>, %arg4: memref<1x128xf32, #tpu.memory_space<vmem>>, %arg5: memref<32x128xbf16, #tpu.memory_space<vmem>>, %arg6: memref<32x128xbf16, #tpu.memory_space<vmem>>, %arg7: memref<1x128xf32, #tpu.memory_space<vmem>>, %arg8: memref<32x128xbf16, #tpu.memory_space<vmem>>, %arg9: memref<1x128xf32, #tpu.memory_space<vmem>>, %arg10: memref<8x128xf32, #tpu.memory_space<vmem>>, %arg11: memref<64x128xf32, #tpu.memory_space<vmem>>, %arg12: memref<64x32xbf16, #tpu.memory_space<vmem>>) attributes {dimension_semantics = [], scalar_prefetch = 0 : i64, scratch_operands = 2 : i64, tpu.core_type = #tpu.core_type<tc>} {
    %c0 = arith.constant 0 : index
    %c0_0 = arith.constant 0 : index
    %0 = vector.load %arg0[%c0, %c0_0] : memref<8x1xi32, #tpu.memory_space<vmem>>, vector<8x1xi32>
    %cst = arith.constant 0.000000e+00 : f32
    %1 = vector.broadcast %cst : f32 to vector<8x32xf32>
    %c0_1 = arith.constant 0 : index
    %c0_2 = arith.constant 0 : index
    %2 = vector.load %arg1[%c0_1, %c0_2] : memref<64x32xbf16, #tpu.memory_space<vmem>>, vector<64x32xbf16>
    %c0_3 = arith.constant 0 : index
    %c0_4 = arith.constant 0 : index
    %3 = vector.load %arg2[%c0_3, %c0_4] : memref<32x128xbf16, #tpu.memory_space<vmem>>, vector<32x128xbf16>
    %cst_5 = arith.constant dense<0.000000e+00> : vector<64x128xf32>
    %4 = tpu.matmul %2, %3, %cst_5 {dimension_numbers = #tpu.dot_dimension_numbers<[1], [0], [0], [1], [0, 0, 1, 1], [], []>} : vector<64x32xbf16>, vector<32x128xbf16>, vector<64x128xf32> -> vector<64x128xf32>
    %c0_6 = arith.constant 0 : index
    %c0_7 = arith.constant 0 : index
    %5 = vector.load %arg4[%c0_6, %c0_7] : memref<1x128xf32, #tpu.memory_space<vmem>>, vector<1x128xf32>
    %6 = vector.broadcast %5 : vector<1x128xf32> to vector<64x128xf32>
    %7 = arith.addf %4, %6 : vector<64x128xf32>
    %c0_8 = arith.constant 0 : index
    %c0_9 = arith.constant 0 : index
    %8 = vector.load %arg11[%c0_8, %c0_9] : memref<64x128xf32, #tpu.memory_space<vmem>>, vector<64x128xf32>
    tpu.vector_store %arg11[%c0_8, %c0_9], %7 {strides = array<i32>} : memref<64x128xf32, #tpu.memory_space<vmem>>, vector<64x128xf32>,
    %c0_10 = arith.constant 0 : index
    %c0_11 = arith.constant 0 : index
    %9 = vector.load %arg3[%c0_10, %c0_11] : memref<32x128xbf16, #tpu.memory_space<vmem>>, vector<32x128xbf16>
    %c0_i32 = arith.constant 0 : i32
    %c8_i32 = arith.constant 8 : i32
    %10 = arith.muli %c0_i32, %c8_i32 : i32
    %11 = tpu.assume_multiple %10, 8 : i32
    %12 = arith.index_cast %11 : i32 to index
    %c0_12 = arith.constant 0 : index
    %13 = vector.load %arg11[%12, %c0_12] : memref<64x128xf32, #tpu.memory_space<vmem>>, vector<8x128xf32>
    %14 = arith.truncf %1 : vector<8x32xf32> to vector<8x32xbf16>
    %cst_13 = arith.constant dense<0.000000e+00> : vector<8x128xf32>
    %15 = tpu.matmul %14, %9, %cst_13 {dimension_numbers = #tpu.dot_dimension_numbers<[1], [0], [0], [1], [0, 0, 1, 1], [], []>} : vector<8x32xbf16>, vector<32x128xbf16>, vector<8x128xf32> -> vector<8x128xf32>
    %16 = arith.addf %13, %15 : vector<8x128xf32>
    %17 = vector.extract_strided_slice %16 {offsets = [0, 0], sizes = [8, 96], strides = [1, 1]} : vector<8x128xf32> to vector<8x96xf32>
    %18 = arith.negf %17 : vector<8x96xf32>
    %19 = math.exp %18 : vector<8x96xf32>
    %cst_14 = arith.constant 1.000000e+00 : f32
    %20 = vector.broadcast %cst_14 : f32 to vector<8x96xf32>
    %21 = arith.addf %20, %19 : vector<8x96xf32>
    %22 = arith.divf %20, %21 : vector<8x96xf32>
    %23 = vector.extract_strided_slice %16 {offsets = [0, 96], sizes = [8, 32], strides = [1, 1]} : vector<8x128xf32> to vector<8x32xf32>
    %24 = math.tanh %23 : vector<8x32xf32>
    %25 = vector.extract_strided_slice %22 {offsets = [0, 0], sizes = [8, 32], strides = [1, 1]} : vector<8x96xf32> to vector<8x32xf32>
    %26 = vector.extract_strided_slice %22 {offsets = [0, 32], sizes = [8, 32], strides = [1, 1]} : vector<8x96xf32> to vector<8x32xf32>
    %27 = vector.extract_strided_slice %22 {offsets = [0, 64], sizes = [8, 32], strides = [1, 1]} : vector<8x96xf32> to vector<8x32xf32>
    %28 = arith.mulf %26, %1 : vector<8x32xf32>
    %29 = arith.mulf %25, %24 : vector<8x32xf32>
    %30 = arith.addf %28, %29 : vector<8x32xf32>
    %31 = math.tanh %30 : vector<8x32xf32>
    %32 = arith.mulf %27, %31 : vector<8x32xf32>
    %33 = arith.truncf %32 : vector<8x32xf32> to vector<8x32xbf16>
    %34 = arith.index_cast %11 : i32 to index
    %c0_15 = arith.constant 0 : index
    %35 = vector.load %arg12[%34, %c0_15] : memref<64x32xbf16, #tpu.memory_space<vmem>>, vector<8x32xbf16>
    tpu.vector_store %arg12[%34, %c0_15], %33 {strides = array<i32>} : memref<64x32xbf16, #tpu.memory_space<vmem>>, vector<8x32xbf16>,
    %c1_i32 = arith.constant 1 : i32
    %c8_i32_16 = arith.constant 8 : i32
    %36 = arith.muli %c1_i32, %c8_i32_16 : i32
    %37 = tpu.assume_multiple %36, 8 : i32
    %38 = arith.index_cast %37 : i32 to index
    %c0_17 = arith.constant 0 : index
    %39 = vector.load %arg11[%38, %c0_17] : memref<64x128xf32, #tpu.memory_space<vmem>>, vector<8x128xf32>
    %40 = arith.truncf %32 : vector<8x32xf32> to vector<8x32xbf16>
    %cst_18 = arith.constant dense<0.000000e+00> : vector<8x128xf32>
    %41 = tpu.matmul %40, %9, %cst_18 {dimension_numbers = #tpu.dot_dimension_numbers<[1], [0], [0], [1], [0, 0, 1, 1], [], []>} : vector<8x32xbf16>, vector<32x128xbf16>, vector<8x128xf32> -> vector<8x128xf32>
    %42 = arith.addf %39, %41 : vector<8x128xf32>
    %43 = vector.extract_strided_slice %42 {offsets = [0, 0], sizes = [8, 96], strides = [1, 1]} : vector<8x128xf32> to vector<8x96xf32>
    %44 = arith.negf %43 : vector<8x96xf32>
    %45 = math.exp %44 : vector<8x96xf32>
    %cst_19 = arith.constant 1.000000e+00 : f32
    %46 = vector.broadcast %cst_19 : f32 to vector<8x96xf32>
    %47 = arith.addf %46, %45 : vector<8x96xf32>
    %48 = arith.divf %46, %47 : vector<8x96xf32>
    %49 = vector.extract_strided_slice %42 {offsets = [0, 96], sizes = [8, 32], strides = [1, 1]} : vector<8x128xf32> to vector<8x32xf32>
    %50 = math.tanh %49 : vector<8x32xf32>
    %51 = vector.extract_strided_slice %48 {offsets = [0, 0], sizes = [8, 32], strides = [1, 1]} : vector<8x96xf32> to vector<8x32xf32>
    %52 = vector.extract_strided_slice %48 {offsets = [0, 32], sizes = [8, 32], strides = [1, 1]} : vector<8x96xf32> to vector<8x32xf32>
    %53 = vector.extract_strided_slice %48 {offsets = [0, 64], sizes = [8, 32], strides = [1, 1]} : vector<8x96xf32> to vector<8x32xf32>
    %54 = arith.mulf %52, %30 : vector<8x32xf32>
    %55 = arith.mulf %51, %50 : vector<8x32xf32>
    %56 = arith.addf %54, %55 : vector<8x32xf32>
    %57 = math.tanh %56 : vector<8x32xf32>
    %58 = arith.mulf %53, %57 : vector<8x32xf32>
    %59 = arith.truncf %58 : vector<8x32xf32> to vector<8x32xbf16>
    %60 = arith.index_cast %37 : i32 to index
    %c0_20 = arith.constant 0 : index
    %61 = vector.load %arg12[%60, %c0_20] : memref<64x32xbf16, #tpu.memory_space<vmem>>, vector<8x32xbf16>
    tpu.vector_store %arg12[%60, %c0_20], %59 {strides = array<i32>} : memref<64x32xbf16, #tpu.memory_space<vmem>>, vector<8x32xbf16>,
    %c2_i32 = arith.constant 2 : i32
    %c8_i32_21 = arith.constant 8 : i32
    %62 = arith.muli %c2_i32, %c8_i32_21 : i32
    %63 = tpu.assume_multiple %62, 8 : i32
    %64 = arith.index_cast %63 : i32 to index
    %c0_22 = arith.constant 0 : index
    %65 = vector.load %arg11[%64, %c0_22] : memref<64x128xf32, #tpu.memory_space<vmem>>, vector<8x128xf32>
    %66 = arith.truncf %58 : vector<8x32xf32> to vector<8x32xbf16>
    %cst_23 = arith.constant dense<0.000000e+00> : vector<8x128xf32>
    %67 = tpu.matmul %66, %9, %cst_23 {dimension_numbers = #tpu.dot_dimension_numbers<[1], [0], [0], [1], [0, 0, 1, 1], [], []>} : vector<8x32xbf16>, vector<32x128xbf16>, vector<8x128xf32> -> vector<8x128xf32>
    %68 = arith.addf %65, %67 : vector<8x128xf32>
    %69 = vector.extract_strided_slice %68 {offsets = [0, 0], sizes = [8, 96], strides = [1, 1]} : vector<8x128xf32> to vector<8x96xf32>
    %70 = arith.negf %69 : vector<8x96xf32>
    %71 = math.exp %70 : vector<8x96xf32>
    %cst_24 = arith.constant 1.000000e+00 : f32
    %72 = vector.broadcast %cst_24 : f32 to vector<8x96xf32>
    %73 = arith.addf %72, %71 : vector<8x96xf32>
    %74 = arith.divf %72, %73 : vector<8x96xf32>
    %75 = vector.extract_strided_slice %68 {offsets = [0, 96], sizes = [8, 32], strides = [1, 1]} : vector<8x128xf32> to vector<8x32xf32>
    %76 = math.tanh %75 : vector<8x32xf32>
    %77 = vector.extract_strided_slice %74 {offsets = [0, 0], sizes = [8, 32], strides = [1, 1]} : vector<8x96xf32> to vector<8x32xf32>
    %78 = vector.extract_strided_slice %74 {offsets = [0, 32], sizes = [8, 32], strides = [1, 1]} : vector<8x96xf32> to vector<8x32xf32>
    %79 = vector.extract_strided_slice %74 {offsets = [0, 64], sizes = [8, 32], strides = [1, 1]} : vector<8x96xf32> to vector<8x32xf32>
    %80 = arith.mulf %78, %56 : vector<8x32xf32>
    %81 = arith.mulf %77, %76 : vector<8x32xf32>
    %82 = arith.addf %80, %81 : vector<8x32xf32>
    %83 = math.tanh %82 : vector<8x32xf32>
    %84 = arith.mulf %79, %83 : vector<8x32xf32>
    %85 = arith.truncf %84 : vector<8x32xf32> to vector<8x32xbf16>
    %86 = arith.index_cast %63 : i32 to index
    %c0_25 = arith.constant 0 : index
    %87 = vector.load %arg12[%86, %c0_25] : memref<64x32xbf16, #tpu.memory_space<vmem>>, vector<8x32xbf16>
    tpu.vector_store %arg12[%86, %c0_25], %85 {strides = array<i32>} : memref<64x32xbf16, #tpu.memory_space<vmem>>, vector<8x32xbf16>,
    %c3_i32 = arith.constant 3 : i32
    %c8_i32_26 = arith.constant 8 : i32
    %88 = arith.muli %c3_i32, %c8_i32_26 : i32
    %89 = tpu.assume_multiple %88, 8 : i32
    %90 = arith.index_cast %89 : i32 to index
    %c0_27 = arith.constant 0 : index
    %91 = vector.load %arg11[%90, %c0_27] : memref<64x128xf32, #tpu.memory_space<vmem>>, vector<8x128xf32>
    %92 = arith.truncf %84 : vector<8x32xf32> to vector<8x32xbf16>
    %cst_28 = arith.constant dense<0.000000e+00> : vector<8x128xf32>
    %93 = tpu.matmul %92, %9, %cst_28 {dimension_numbers = #tpu.dot_dimension_numbers<[1], [0], [0], [1], [0, 0, 1, 1], [], []>} : vector<8x32xbf16>, vector<32x128xbf16>, vector<8x128xf32> -> vector<8x128xf32>
    %94 = arith.addf %91, %93 : vector<8x128xf32>
    %95 = vector.extract_strided_slice %94 {offsets = [0, 0], sizes = [8, 96], strides = [1, 1]} : vector<8x128xf32> to vector<8x96xf32>
    %96 = arith.negf %95 : vector<8x96xf32>
    %97 = math.exp %96 : vector<8x96xf32>
    %cst_29 = arith.constant 1.000000e+00 : f32
    %98 = vector.broadcast %cst_29 : f32 to vector<8x96xf32>
    %99 = arith.addf %98, %97 : vector<8x96xf32>
    %100 = arith.divf %98, %99 : vector<8x96xf32>
    %101 = vector.extract_strided_slice %94 {offsets = [0, 96], sizes = [8, 32], strides = [1, 1]} : vector<8x128xf32> to vector<8x32xf32>
    %102 = math.tanh %101 : vector<8x32xf32>
    %103 = vector.extract_strided_slice %100 {offsets = [0, 0], sizes = [8, 32], strides = [1, 1]} : vector<8x96xf32> to vector<8x32xf32>
    %104 = vector.extract_strided_slice %100 {offsets = [0, 32], sizes = [8, 32], strides = [1, 1]} : vector<8x96xf32> to vector<8x32xf32>
    %105 = vector.extract_strided_slice %100 {offsets = [0, 64], sizes = [8, 32], strides = [1, 1]} : vector<8x96xf32> to vector<8x32xf32>
    %106 = arith.mulf %104, %82 : vector<8x32xf32>
    %107 = arith.mulf %103, %102 : vector<8x32xf32>
    %108 = arith.addf %106, %107 : vector<8x32xf32>
    %109 = math.tanh %108 : vector<8x32xf32>
    %110 = arith.mulf %105, %109 : vector<8x32xf32>
    %111 = arith.truncf %110 : vector<8x32xf32> to vector<8x32xbf16>
    %112 = arith.index_cast %89 : i32 to index
    %c0_30 = arith.constant 0 : index
    %113 = vector.load %arg12[%112, %c0_30] : memref<64x32xbf16, #tpu.memory_space<vmem>>, vector<8x32xbf16>
    tpu.vector_store %arg12[%112, %c0_30], %111 {strides = array<i32>} : memref<64x32xbf16, #tpu.memory_space<vmem>>, vector<8x32xbf16>,
    %c4_i32 = arith.constant 4 : i32
    %c8_i32_31 = arith.constant 8 : i32
    %114 = arith.muli %c4_i32, %c8_i32_31 : i32
    %115 = tpu.assume_multiple %114, 8 : i32
    %116 = arith.index_cast %115 : i32 to index
    %c0_32 = arith.constant 0 : index
    %117 = vector.load %arg11[%116, %c0_32] : memref<64x128xf32, #tpu.memory_space<vmem>>, vector<8x128xf32>
    %118 = arith.truncf %110 : vector<8x32xf32> to vector<8x32xbf16>
    %cst_33 = arith.constant dense<0.000000e+00> : vector<8x128xf32>
    %119 = tpu.matmul %118, %9, %cst_33 {dimension_numbers = #tpu.dot_dimension_numbers<[1], [0], [0], [1], [0, 0, 1, 1], [], []>} : vector<8x32xbf16>, vector<32x128xbf16>, vector<8x128xf32> -> vector<8x128xf32>
    %120 = arith.addf %117, %119 : vector<8x128xf32>
    %121 = vector.extract_strided_slice %120 {offsets = [0, 0], sizes = [8, 96], strides = [1, 1]} : vector<8x128xf32> to vector<8x96xf32>
    %122 = arith.negf %121 : vector<8x96xf32>
    %123 = math.exp %122 : vector<8x96xf32>
    %cst_34 = arith.constant 1.000000e+00 : f32
    %124 = vector.broadcast %cst_34 : f32 to vector<8x96xf32>
    %125 = arith.addf %124, %123 : vector<8x96xf32>
    %126 = arith.divf %124, %125 : vector<8x96xf32>
    %127 = vector.extract_strided_slice %120 {offsets = [0, 96], sizes = [8, 32], strides = [1, 1]} : vector<8x128xf32> to vector<8x32xf32>
    %128 = math.tanh %127 : vector<8x32xf32>
    %129 = vector.extract_strided_slice %126 {offsets = [0, 0], sizes = [8, 32], strides = [1, 1]} : vector<8x96xf32> to vector<8x32xf32>
    %130 = vector.extract_strided_slice %126 {offsets = [0, 32], sizes = [8, 32], strides = [1, 1]} : vector<8x96xf32> to vector<8x32xf32>
    %131 = vector.extract_strided_slice %126 {offsets = [0, 64], sizes = [8, 32], strides = [1, 1]} : vector<8x96xf32> to vector<8x32xf32>
    %132 = arith.mulf %130, %108 : vector<8x32xf32>
    %133 = arith.mulf %129, %128 : vector<8x32xf32>
    %134 = arith.addf %132, %133 : vector<8x32xf32>
    %135 = math.tanh %134 : vector<8x32xf32>
    %136 = arith.mulf %131, %135 : vector<8x32xf32>
    %137 = arith.truncf %136 : vector<8x32xf32> to vector<8x32xbf16>
    %138 = arith.index_cast %115 : i32 to index
    %c0_35 = arith.constant 0 : index
    %139 = vector.load %arg12[%138, %c0_35] : memref<64x32xbf16, #tpu.memory_space<vmem>>, vector<8x32xbf16>
    tpu.vector_store %arg12[%138, %c0_35], %137 {strides = array<i32>} : memref<64x32xbf16, #tpu.memory_space<vmem>>, vector<8x32xbf16>,
    %c5_i32 = arith.constant 5 : i32
    %c8_i32_36 = arith.constant 8 : i32
    %140 = arith.muli %c5_i32, %c8_i32_36 : i32
    %141 = tpu.assume_multiple %140, 8 : i32
    %142 = arith.index_cast %141 : i32 to index
    %c0_37 = arith.constant 0 : index
    %143 = vector.load %arg11[%142, %c0_37] : memref<64x128xf32, #tpu.memory_space<vmem>>, vector<8x128xf32>
    %144 = arith.truncf %136 : vector<8x32xf32> to vector<8x32xbf16>
    %cst_38 = arith.constant dense<0.000000e+00> : vector<8x128xf32>
    %145 = tpu.matmul %144, %9, %cst_38 {dimension_numbers = #tpu.dot_dimension_numbers<[1], [0], [0], [1], [0, 0, 1, 1], [], []>} : vector<8x32xbf16>, vector<32x128xbf16>, vector<8x128xf32> -> vector<8x128xf32>
    %146 = arith.addf %143, %145 : vector<8x128xf32>
    %147 = vector.extract_strided_slice %146 {offsets = [0, 0], sizes = [8, 96], strides = [1, 1]} : vector<8x128xf32> to vector<8x96xf32>
    %148 = arith.negf %147 : vector<8x96xf32>
    %149 = math.exp %148 : vector<8x96xf32>
    %cst_39 = arith.constant 1.000000e+00 : f32
    %150 = vector.broadcast %cst_39 : f32 to vector<8x96xf32>
    %151 = arith.addf %150, %149 : vector<8x96xf32>
    %152 = arith.divf %150, %151 : vector<8x96xf32>
    %153 = vector.extract_strided_slice %146 {offsets = [0, 96], sizes = [8, 32], strides = [1, 1]} : vector<8x128xf32> to vector<8x32xf32>
    %154 = math.tanh %153 : vector<8x32xf32>
    %155 = vector.extract_strided_slice %152 {offsets = [0, 0], sizes = [8, 32], strides = [1, 1]} : vector<8x96xf32> to vector<8x32xf32>
    %156 = vector.extract_strided_slice %152 {offsets = [0, 32], sizes = [8, 32], strides = [1, 1]} : vector<8x96xf32> to vector<8x32xf32>
    %157 = vector.extract_strided_slice %152 {offsets = [0, 64], sizes = [8, 32], strides = [1, 1]} : vector<8x96xf32> to vector<8x32xf32>
    %158 = arith.mulf %156, %134 : vector<8x32xf32>
    %159 = arith.mulf %155, %154 : vector<8x32xf32>
    %160 = arith.addf %158, %159 : vector<8x32xf32>
    %161 = math.tanh %160 : vector<8x32xf32>
    %162 = arith.mulf %157, %161 : vector<8x32xf32>
    %163 = arith.truncf %162 : vector<8x32xf32> to vector<8x32xbf16>
    %164 = arith.index_cast %141 : i32 to index
    %c0_40 = arith.constant 0 : index
    %165 = vector.load %arg12[%164, %c0_40] : memref<64x32xbf16, #tpu.memory_space<vmem>>, vector<8x32xbf16>
    tpu.vector_store %arg12[%164, %c0_40], %163 {strides = array<i32>} : memref<64x32xbf16, #tpu.memory_space<vmem>>, vector<8x32xbf16>,
    %c6_i32 = arith.constant 6 : i32
    %c8_i32_41 = arith.constant 8 : i32
    %166 = arith.muli %c6_i32, %c8_i32_41 : i32
    %167 = tpu.assume_multiple %166, 8 : i32
    %168 = arith.index_cast %167 : i32 to index
    %c0_42 = arith.constant 0 : index
    %169 = vector.load %arg11[%168, %c0_42] : memref<64x128xf32, #tpu.memory_space<vmem>>, vector<8x128xf32>
    %170 = arith.truncf %162 : vector<8x32xf32> to vector<8x32xbf16>
    %cst_43 = arith.constant dense<0.000000e+00> : vector<8x128xf32>
    %171 = tpu.matmul %170, %9, %cst_43 {dimension_numbers = #tpu.dot_dimension_numbers<[1], [0], [0], [1], [0, 0, 1, 1], [], []>} : vector<8x32xbf16>, vector<32x128xbf16>, vector<8x128xf32> -> vector<8x128xf32>
    %172 = arith.addf %169, %171 : vector<8x128xf32>
    %173 = vector.extract_strided_slice %172 {offsets = [0, 0], sizes = [8, 96], strides = [1, 1]} : vector<8x128xf32> to vector<8x96xf32>
    %174 = arith.negf %173 : vector<8x96xf32>
    %175 = math.exp %174 : vector<8x96xf32>
    %cst_44 = arith.constant 1.000000e+00 : f32
    %176 = vector.broadcast %cst_44 : f32 to vector<8x96xf32>
    %177 = arith.addf %176, %175 : vector<8x96xf32>
    %178 = arith.divf %176, %177 : vector<8x96xf32>
    %179 = vector.extract_strided_slice %172 {offsets = [0, 96], sizes = [8, 32], strides = [1, 1]} : vector<8x128xf32> to vector<8x32xf32>
    %180 = math.tanh %179 : vector<8x32xf32>
    %181 = vector.extract_strided_slice %178 {offsets = [0, 0], sizes = [8, 32], strides = [1, 1]} : vector<8x96xf32> to vector<8x32xf32>
    %182 = vector.extract_strided_slice %178 {offsets = [0, 32], sizes = [8, 32], strides = [1, 1]} : vector<8x96xf32> to vector<8x32xf32>
    %183 = vector.extract_strided_slice %178 {offsets = [0, 64], sizes = [8, 32], strides = [1, 1]} : vector<8x96xf32> to vector<8x32xf32>
    %184 = arith.mulf %182, %160 : vector<8x32xf32>
    %185 = arith.mulf %181, %180 : vector<8x32xf32>
    %186 = arith.addf %184, %185 : vector<8x32xf32>
    %187 = math.tanh %186 : vector<8x32xf32>
    %188 = arith.mulf %183, %187 : vector<8x32xf32>
    %189 = arith.truncf %188 : vector<8x32xf32> to vector<8x32xbf16>
    %190 = arith.index_cast %167 : i32 to index
    %c0_45 = arith.constant 0 : index
    %191 = vector.load %arg12[%190, %c0_45] : memref<64x32xbf16, #tpu.memory_space<vmem>>, vector<8x32xbf16>
    tpu.vector_store %arg12[%190, %c0_45], %189 {strides = array<i32>} : memref<64x32xbf16, #tpu.memory_space<vmem>>, vector<8x32xbf16>,
    %c7_i32 = arith.constant 7 : i32
    %c8_i32_46 = arith.constant 8 : i32
    %192 = arith.muli %c7_i32, %c8_i32_46 : i32
    %193 = tpu.assume_multiple %192, 8 : i32
    %194 = arith.index_cast %193 : i32 to index
    %c0_47 = arith.constant 0 : index
    %195 = vector.load %arg11[%194, %c0_47] : memref<64x128xf32, #tpu.memory_space<vmem>>, vector<8x128xf32>
    %196 = arith.truncf %188 : vector<8x32xf32> to vector<8x32xbf16>
    %cst_48 = arith.constant dense<0.000000e+00> : vector<8x128xf32>
    %197 = tpu.matmul %196, %9, %cst_48 {dimension_numbers = #tpu.dot_dimension_numbers<[1], [0], [0], [1], [0, 0, 1, 1], [], []>} : vector<8x32xbf16>, vector<32x128xbf16>, vector<8x128xf32> -> vector<8x128xf32>
    %198 = arith.addf %195, %197 : vector<8x128xf32>
    %199 = vector.extract_strided_slice %198 {offsets = [0, 0], sizes = [8, 96], strides = [1, 1]} : vector<8x128xf32> to vector<8x96xf32>
    %200 = arith.negf %199 : vector<8x96xf32>
    %201 = math.exp %200 : vector<8x96xf32>
    %cst_49 = arith.constant 1.000000e+00 : f32
    %202 = vector.broadcast %cst_49 : f32 to vector<8x96xf32>
    %203 = arith.addf %202, %201 : vector<8x96xf32>
    %204 = arith.divf %202, %203 : vector<8x96xf32>
    %205 = vector.extract_strided_slice %198 {offsets = [0, 96], sizes = [8, 32], strides = [1, 1]} : vector<8x128xf32> to vector<8x32xf32>
    %206 = math.tanh %205 : vector<8x32xf32>
    %207 = vector.extract_strided_slice %204 {offsets = [0, 0], sizes = [8, 32], strides = [1, 1]} : vector<8x96xf32> to vector<8x32xf32>
    %208 = vector.extract_strided_slice %204 {offsets = [0, 32], sizes = [8, 32], strides = [1, 1]} : vector<8x96xf32> to vector<8x32xf32>
    %209 = vector.extract_strided_slice %204 {offsets = [0, 64], sizes = [8, 32], strides = [1, 1]} : vector<8x96xf32> to vector<8x32xf32>
    %210 = arith.mulf %208, %186 : vector<8x32xf32>
    %211 = arith.mulf %207, %206 : vector<8x32xf32>
    %212 = arith.addf %210, %211 : vector<8x32xf32>
    %213 = math.tanh %212 : vector<8x32xf32>
    %214 = arith.mulf %209, %213 : vector<8x32xf32>
    %215 = arith.truncf %214 : vector<8x32xf32> to vector<8x32xbf16>
    %216 = arith.index_cast %193 : i32 to index
    %c0_50 = arith.constant 0 : index
    %217 = vector.load %arg12[%216, %c0_50] : memref<64x32xbf16, #tpu.memory_space<vmem>>, vector<8x32xbf16>
    tpu.vector_store %arg12[%216, %c0_50], %215 {strides = array<i32>} : memref<64x32xbf16, #tpu.memory_space<vmem>>, vector<8x32xbf16>,
    %c8_i32_51 = arith.constant 8 : i32
    %c0_52 = arith.constant 0 : index
    %c0_53 = arith.constant 0 : index
    %218 = vector.load %arg12[%c0_52, %c0_53] : memref<64x32xbf16, #tpu.memory_space<vmem>>, vector<64x32xbf16>
    %c0_54 = arith.constant 0 : index
    %c0_55 = arith.constant 0 : index
    %219 = vector.load %arg5[%c0_54, %c0_55] : memref<32x128xbf16, #tpu.memory_space<vmem>>, vector<32x128xbf16>
    %cst_56 = arith.constant dense<0.000000e+00> : vector<64x128xf32>
    %220 = tpu.matmul %218, %219, %cst_56 {dimension_numbers = #tpu.dot_dimension_numbers<[1], [0], [0], [1], [0, 0, 1, 1], [], []>} : vector<64x32xbf16>, vector<32x128xbf16>, vector<64x128xf32> -> vector<64x128xf32>
    %c0_57 = arith.constant 0 : index
    %c0_58 = arith.constant 0 : index
    %221 = vector.load %arg7[%c0_57, %c0_58] : memref<1x128xf32, #tpu.memory_space<vmem>>, vector<1x128xf32>
    %222 = vector.broadcast %221 : vector<1x128xf32> to vector<64x128xf32>
    %223 = arith.addf %220, %222 : vector<64x128xf32>
    %c0_59 = arith.constant 0 : index
    %c0_60 = arith.constant 0 : index
    %224 = vector.load %arg11[%c0_59, %c0_60] : memref<64x128xf32, #tpu.memory_space<vmem>>, vector<64x128xf32>
    tpu.vector_store %arg11[%c0_59, %c0_60], %223 {strides = array<i32>} : memref<64x128xf32, #tpu.memory_space<vmem>>, vector<64x128xf32>,
    %c0_61 = arith.constant 0 : index
    %c0_62 = arith.constant 0 : index
    %225 = vector.load %arg6[%c0_61, %c0_62] : memref<32x128xbf16, #tpu.memory_space<vmem>>, vector<32x128xbf16>
    %c0_i32_63 = arith.constant 0 : i32
    %c8_i32_64 = arith.constant 8 : i32
    %226 = arith.muli %c0_i32_63, %c8_i32_64 : i32
    %227 = tpu.assume_multiple %226, 8 : i32
    %228 = arith.index_cast %227 : i32 to index
    %c0_65 = arith.constant 0 : index
    %229 = vector.load %arg11[%228, %c0_65] : memref<64x128xf32, #tpu.memory_space<vmem>>, vector<8x128xf32>
    %230 = arith.truncf %1 : vector<8x32xf32> to vector<8x32xbf16>
    %cst_66 = arith.constant dense<0.000000e+00> : vector<8x128xf32>
    %231 = tpu.matmul %230, %225, %cst_66 {dimension_numbers = #tpu.dot_dimension_numbers<[1], [0], [0], [1], [0, 0, 1, 1], [], []>} : vector<8x32xbf16>, vector<32x128xbf16>, vector<8x128xf32> -> vector<8x128xf32>
    %232 = arith.addf %229, %231 : vector<8x128xf32>
    %233 = vector.extract_strided_slice %232 {offsets = [0, 0], sizes = [8, 96], strides = [1, 1]} : vector<8x128xf32> to vector<8x96xf32>
    %234 = arith.negf %233 : vector<8x96xf32>
    %235 = math.exp %234 : vector<8x96xf32>
    %cst_67 = arith.constant 1.000000e+00 : f32
    %236 = vector.broadcast %cst_67 : f32 to vector<8x96xf32>
    %237 = arith.addf %236, %235 : vector<8x96xf32>
    %238 = arith.divf %236, %237 : vector<8x96xf32>
    %239 = vector.extract_strided_slice %232 {offsets = [0, 96], sizes = [8, 32], strides = [1, 1]} : vector<8x128xf32> to vector<8x32xf32>
    %240 = math.tanh %239 : vector<8x32xf32>
    %241 = vector.extract_strided_slice %238 {offsets = [0, 0], sizes = [8, 32], strides = [1, 1]} : vector<8x96xf32> to vector<8x32xf32>
    %242 = vector.extract_strided_slice %238 {offsets = [0, 32], sizes = [8, 32], strides = [1, 1]} : vector<8x96xf32> to vector<8x32xf32>
    %243 = vector.extract_strided_slice %238 {offsets = [0, 64], sizes = [8, 32], strides = [1, 1]} : vector<8x96xf32> to vector<8x32xf32>
    %244 = arith.mulf %242, %1 : vector<8x32xf32>
    %245 = arith.mulf %241, %240 : vector<8x32xf32>
    %246 = arith.addf %244, %245 : vector<8x32xf32>
    %247 = math.tanh %246 : vector<8x32xf32>
    %248 = arith.mulf %243, %247 : vector<8x32xf32>
    %c1_i32_68 = arith.constant 1 : i32
    %249 = arith.addi %c0_i32_63, %c1_i32_68 : i32
    %250 = vector.broadcast %249 : i32 to vector<8x1xi32>
    %251 = arith.cmpi eq, %0, %250 : vector<8x1xi32>
    %252 = vector.shape_cast %251 : vector<8x1xi1> to vector<8x1xi1>
    %253 = vector.broadcast %252 : vector<8x1xi1> to vector<8x32xi1>
    %254 = arith.select %253, %248, %1 : vector<8x32xi1>, vector<8x32xf32>
    %c1_i32_69 = arith.constant 1 : i32
    %c8_i32_70 = arith.constant 8 : i32
    %255 = arith.muli %c1_i32_69, %c8_i32_70 : i32
    %256 = tpu.assume_multiple %255, 8 : i32
    %257 = arith.index_cast %256 : i32 to index
    %c0_71 = arith.constant 0 : index
    %258 = vector.load %arg11[%257, %c0_71] : memref<64x128xf32, #tpu.memory_space<vmem>>, vector<8x128xf32>
    %259 = arith.truncf %248 : vector<8x32xf32> to vector<8x32xbf16>
    %cst_72 = arith.constant dense<0.000000e+00> : vector<8x128xf32>
    %260 = tpu.matmul %259, %225, %cst_72 {dimension_numbers = #tpu.dot_dimension_numbers<[1], [0], [0], [1], [0, 0, 1, 1], [], []>} : vector<8x32xbf16>, vector<32x128xbf16>, vector<8x128xf32> -> vector<8x128xf32>
    %261 = arith.addf %258, %260 : vector<8x128xf32>
    %262 = vector.extract_strided_slice %261 {offsets = [0, 0], sizes = [8, 96], strides = [1, 1]} : vector<8x128xf32> to vector<8x96xf32>
    %263 = arith.negf %262 : vector<8x96xf32>
    %264 = math.exp %263 : vector<8x96xf32>
    %cst_73 = arith.constant 1.000000e+00 : f32
    %265 = vector.broadcast %cst_73 : f32 to vector<8x96xf32>
    %266 = arith.addf %265, %264 : vector<8x96xf32>
    %267 = arith.divf %265, %266 : vector<8x96xf32>
    %268 = vector.extract_strided_slice %261 {offsets = [0, 96], sizes = [8, 32], strides = [1, 1]} : vector<8x128xf32> to vector<8x32xf32>
    %269 = math.tanh %268 : vector<8x32xf32>
    %270 = vector.extract_strided_slice %267 {offsets = [0, 0], sizes = [8, 32], strides = [1, 1]} : vector<8x96xf32> to vector<8x32xf32>
    %271 = vector.extract_strided_slice %267 {offsets = [0, 32], sizes = [8, 32], strides = [1, 1]} : vector<8x96xf32> to vector<8x32xf32>
    %272 = vector.extract_strided_slice %267 {offsets = [0, 64], sizes = [8, 32], strides = [1, 1]} : vector<8x96xf32> to vector<8x32xf32>
    %273 = arith.mulf %271, %246 : vector<8x32xf32>
    %274 = arith.mulf %270, %269 : vector<8x32xf32>
    %275 = arith.addf %273, %274 : vector<8x32xf32>
    %276 = math.tanh %275 : vector<8x32xf32>
    %277 = arith.mulf %272, %276 : vector<8x32xf32>
    %c1_i32_74 = arith.constant 1 : i32
    %278 = arith.addi %c1_i32_69, %c1_i32_74 : i32
    %279 = vector.broadcast %278 : i32 to vector<8x1xi32>
    %280 = arith.cmpi eq, %0, %279 : vector<8x1xi32>
    %281 = vector.shape_cast %280 : vector<8x1xi1> to vector<8x1xi1>
    %282 = vector.broadcast %281 : vector<8x1xi1> to vector<8x32xi1>
    %283 = arith.select %282, %277, %254 : vector<8x32xi1>, vector<8x32xf32>
    %c2_i32_75 = arith.constant 2 : i32
    %c8_i32_76 = arith.constant 8 : i32
    %284 = arith.muli %c2_i32_75, %c8_i32_76 : i32
    %285 = tpu.assume_multiple %284, 8 : i32
    %286 = arith.index_cast %285 : i32 to index
    %c0_77 = arith.constant 0 : index
    %287 = vector.load %arg11[%286, %c0_77] : memref<64x128xf32, #tpu.memory_space<vmem>>, vector<8x128xf32>
    %288 = arith.truncf %277 : vector<8x32xf32> to vector<8x32xbf16>
    %cst_78 = arith.constant dense<0.000000e+00> : vector<8x128xf32>
    %289 = tpu.matmul %288, %225, %cst_78 {dimension_numbers = #tpu.dot_dimension_numbers<[1], [0], [0], [1], [0, 0, 1, 1], [], []>} : vector<8x32xbf16>, vector<32x128xbf16>, vector<8x128xf32> -> vector<8x128xf32>
    %290 = arith.addf %287, %289 : vector<8x128xf32>
    %291 = vector.extract_strided_slice %290 {offsets = [0, 0], sizes = [8, 96], strides = [1, 1]} : vector<8x128xf32> to vector<8x96xf32>
    %292 = arith.negf %291 : vector<8x96xf32>
    %293 = math.exp %292 : vector<8x96xf32>
    %cst_79 = arith.constant 1.000000e+00 : f32
    %294 = vector.broadcast %cst_79 : f32 to vector<8x96xf32>
    %295 = arith.addf %294, %293 : vector<8x96xf32>
    %296 = arith.divf %294, %295 : vector<8x96xf32>
    %297 = vector.extract_strided_slice %290 {offsets = [0, 96], sizes = [8, 32], strides = [1, 1]} : vector<8x128xf32> to vector<8x32xf32>
    %298 = math.tanh %297 : vector<8x32xf32>
    %299 = vector.extract_strided_slice %296 {offsets = [0, 0], sizes = [8, 32], strides = [1, 1]} : vector<8x96xf32> to vector<8x32xf32>
    %300 = vector.extract_strided_slice %296 {offsets = [0, 32], sizes = [8, 32], strides = [1, 1]} : vector<8x96xf32> to vector<8x32xf32>
    %301 = vector.extract_strided_slice %296 {offsets = [0, 64], sizes = [8, 32], strides = [1, 1]} : vector<8x96xf32> to vector<8x32xf32>
    %302 = arith.mulf %300, %275 : vector<8x32xf32>
    %303 = arith.mulf %299, %298 : vector<8x32xf32>
    %304 = arith.addf %302, %303 : vector<8x32xf32>
    %305 = math.tanh %304 : vector<8x32xf32>
    %306 = arith.mulf %301, %305 : vector<8x32xf32>
    %c1_i32_80 = arith.constant 1 : i32
    %307 = arith.addi %c2_i32_75, %c1_i32_80 : i32
    %308 = vector.broadcast %307 : i32 to vector<8x1xi32>
    %309 = arith.cmpi eq, %0, %308 : vector<8x1xi32>
    %310 = vector.shape_cast %309 : vector<8x1xi1> to vector<8x1xi1>
    %311 = vector.broadcast %310 : vector<8x1xi1> to vector<8x32xi1>
    %312 = arith.select %311, %306, %283 : vector<8x32xi1>, vector<8x32xf32>
    %c3_i32_81 = arith.constant 3 : i32
    %c8_i32_82 = arith.constant 8 : i32
    %313 = arith.muli %c3_i32_81, %c8_i32_82 : i32
    %314 = tpu.assume_multiple %313, 8 : i32
    %315 = arith.index_cast %314 : i32 to index
    %c0_83 = arith.constant 0 : index
    %316 = vector.load %arg11[%315, %c0_83] : memref<64x128xf32, #tpu.memory_space<vmem>>, vector<8x128xf32>
    %317 = arith.truncf %306 : vector<8x32xf32> to vector<8x32xbf16>
    %cst_84 = arith.constant dense<0.000000e+00> : vector<8x128xf32>
    %318 = tpu.matmul %317, %225, %cst_84 {dimension_numbers = #tpu.dot_dimension_numbers<[1], [0], [0], [1], [0, 0, 1, 1], [], []>} : vector<8x32xbf16>, vector<32x128xbf16>, vector<8x128xf32> -> vector<8x128xf32>
    %319 = arith.addf %316, %318 : vector<8x128xf32>
    %320 = vector.extract_strided_slice %319 {offsets = [0, 0], sizes = [8, 96], strides = [1, 1]} : vector<8x128xf32> to vector<8x96xf32>
    %321 = arith.negf %320 : vector<8x96xf32>
    %322 = math.exp %321 : vector<8x96xf32>
    %cst_85 = arith.constant 1.000000e+00 : f32
    %323 = vector.broadcast %cst_85 : f32 to vector<8x96xf32>
    %324 = arith.addf %323, %322 : vector<8x96xf32>
    %325 = arith.divf %323, %324 : vector<8x96xf32>
    %326 = vector.extract_strided_slice %319 {offsets = [0, 96], sizes = [8, 32], strides = [1, 1]} : vector<8x128xf32> to vector<8x32xf32>
    %327 = math.tanh %326 : vector<8x32xf32>
    %328 = vector.extract_strided_slice %325 {offsets = [0, 0], sizes = [8, 32], strides = [1, 1]} : vector<8x96xf32> to vector<8x32xf32>
    %329 = vector.extract_strided_slice %325 {offsets = [0, 32], sizes = [8, 32], strides = [1, 1]} : vector<8x96xf32> to vector<8x32xf32>
    %330 = vector.extract_strided_slice %325 {offsets = [0, 64], sizes = [8, 32], strides = [1, 1]} : vector<8x96xf32> to vector<8x32xf32>
    %331 = arith.mulf %329, %304 : vector<8x32xf32>
    %332 = arith.mulf %328, %327 : vector<8x32xf32>
    %333 = arith.addf %331, %332 : vector<8x32xf32>
    %334 = math.tanh %333 : vector<8x32xf32>
    %335 = arith.mulf %330, %334 : vector<8x32xf32>
    %c1_i32_86 = arith.constant 1 : i32
    %336 = arith.addi %c3_i32_81, %c1_i32_86 : i32
    %337 = vector.broadcast %336 : i32 to vector<8x1xi32>
    %338 = arith.cmpi eq, %0, %337 : vector<8x1xi32>
    %339 = vector.shape_cast %338 : vector<8x1xi1> to vector<8x1xi1>
    %340 = vector.broadcast %339 : vector<8x1xi1> to vector<8x32xi1>
    %341 = arith.select %340, %335, %312 : vector<8x32xi1>, vector<8x32xf32>
    %c4_i32_87 = arith.constant 4 : i32
    %c8_i32_88 = arith.constant 8 : i32
    %342 = arith.muli %c4_i32_87, %c8_i32_88 : i32
    %343 = tpu.assume_multiple %342, 8 : i32
    %344 = arith.index_cast %343 : i32 to index
    %c0_89 = arith.constant 0 : index
    %345 = vector.load %arg11[%344, %c0_89] : memref<64x128xf32, #tpu.memory_space<vmem>>, vector<8x128xf32>
    %346 = arith.truncf %335 : vector<8x32xf32> to vector<8x32xbf16>
    %cst_90 = arith.constant dense<0.000000e+00> : vector<8x128xf32>
    %347 = tpu.matmul %346, %225, %cst_90 {dimension_numbers = #tpu.dot_dimension_numbers<[1], [0], [0], [1], [0, 0, 1, 1], [], []>} : vector<8x32xbf16>, vector<32x128xbf16>, vector<8x128xf32> -> vector<8x128xf32>
    %348 = arith.addf %345, %347 : vector<8x128xf32>
    %349 = vector.extract_strided_slice %348 {offsets = [0, 0], sizes = [8, 96], strides = [1, 1]} : vector<8x128xf32> to vector<8x96xf32>
    %350 = arith.negf %349 : vector<8x96xf32>
    %351 = math.exp %350 : vector<8x96xf32>
    %cst_91 = arith.constant 1.000000e+00 : f32
    %352 = vector.broadcast %cst_91 : f32 to vector<8x96xf32>
    %353 = arith.addf %352, %351 : vector<8x96xf32>
    %354 = arith.divf %352, %353 : vector<8x96xf32>
    %355 = vector.extract_strided_slice %348 {offsets = [0, 96], sizes = [8, 32], strides = [1, 1]} : vector<8x128xf32> to vector<8x32xf32>
    %356 = math.tanh %355 : vector<8x32xf32>
    %357 = vector.extract_strided_slice %354 {offsets = [0, 0], sizes = [8, 32], strides = [1, 1]} : vector<8x96xf32> to vector<8x32xf32>
    %358 = vector.extract_strided_slice %354 {offsets = [0, 32], sizes = [8, 32], strides = [1, 1]} : vector<8x96xf32> to vector<8x32xf32>
    %359 = vector.extract_strided_slice %354 {offsets = [0, 64], sizes = [8, 32], strides = [1, 1]} : vector<8x96xf32> to vector<8x32xf32>
    %360 = arith.mulf %358, %333 : vector<8x32xf32>
    %361 = arith.mulf %357, %356 : vector<8x32xf32>
    %362 = arith.addf %360, %361 : vector<8x32xf32>
    %363 = math.tanh %362 : vector<8x32xf32>
    %364 = arith.mulf %359, %363 : vector<8x32xf32>
    %c1_i32_92 = arith.constant 1 : i32
    %365 = arith.addi %c4_i32_87, %c1_i32_92 : i32
    %366 = vector.broadcast %365 : i32 to vector<8x1xi32>
    %367 = arith.cmpi eq, %0, %366 : vector<8x1xi32>
    %368 = vector.shape_cast %367 : vector<8x1xi1> to vector<8x1xi1>
    %369 = vector.broadcast %368 : vector<8x1xi1> to vector<8x32xi1>
    %370 = arith.select %369, %364, %341 : vector<8x32xi1>, vector<8x32xf32>
    %c5_i32_93 = arith.constant 5 : i32
    %c8_i32_94 = arith.constant 8 : i32
    %371 = arith.muli %c5_i32_93, %c8_i32_94 : i32
    %372 = tpu.assume_multiple %371, 8 : i32
    %373 = arith.index_cast %372 : i32 to index
    %c0_95 = arith.constant 0 : index
    %374 = vector.load %arg11[%373, %c0_95] : memref<64x128xf32, #tpu.memory_space<vmem>>, vector<8x128xf32>
    %375 = arith.truncf %364 : vector<8x32xf32> to vector<8x32xbf16>
    %cst_96 = arith.constant dense<0.000000e+00> : vector<8x128xf32>
    %376 = tpu.matmul %375, %225, %cst_96 {dimension_numbers = #tpu.dot_dimension_numbers<[1], [0], [0], [1], [0, 0, 1, 1], [], []>} : vector<8x32xbf16>, vector<32x128xbf16>, vector<8x128xf32> -> vector<8x128xf32>
    %377 = arith.addf %374, %376 : vector<8x128xf32>
    %378 = vector.extract_strided_slice %377 {offsets = [0, 0], sizes = [8, 96], strides = [1, 1]} : vector<8x128xf32> to vector<8x96xf32>
    %379 = arith.negf %378 : vector<8x96xf32>
    %380 = math.exp %379 : vector<8x96xf32>
    %cst_97 = arith.constant 1.000000e+00 : f32
    %381 = vector.broadcast %cst_97 : f32 to vector<8x96xf32>
    %382 = arith.addf %381, %380 : vector<8x96xf32>
    %383 = arith.divf %381, %382 : vector<8x96xf32>
    %384 = vector.extract_strided_slice %377 {offsets = [0, 96], sizes = [8, 32], strides = [1, 1]} : vector<8x128xf32> to vector<8x32xf32>
    %385 = math.tanh %384 : vector<8x32xf32>
    %386 = vector.extract_strided_slice %383 {offsets = [0, 0], sizes = [8, 32], strides = [1, 1]} : vector<8x96xf32> to vector<8x32xf32>
    %387 = vector.extract_strided_slice %383 {offsets = [0, 32], sizes = [8, 32], strides = [1, 1]} : vector<8x96xf32> to vector<8x32xf32>
    %388 = vector.extract_strided_slice %383 {offsets = [0, 64], sizes = [8, 32], strides = [1, 1]} : vector<8x96xf32> to vector<8x32xf32>
    %389 = arith.mulf %387, %362 : vector<8x32xf32>
    %390 = arith.mulf %386, %385 : vector<8x32xf32>
    %391 = arith.addf %389, %390 : vector<8x32xf32>
    %392 = math.tanh %391 : vector<8x32xf32>
    %393 = arith.mulf %388, %392 : vector<8x32xf32>
    %c1_i32_98 = arith.constant 1 : i32
    %394 = arith.addi %c5_i32_93, %c1_i32_98 : i32
    %395 = vector.broadcast %394 : i32 to vector<8x1xi32>
    %396 = arith.cmpi eq, %0, %395 : vector<8x1xi32>
    %397 = vector.shape_cast %396 : vector<8x1xi1> to vector<8x1xi1>
    %398 = vector.broadcast %397 : vector<8x1xi1> to vector<8x32xi1>
    %399 = arith.select %398, %393, %370 : vector<8x32xi1>, vector<8x32xf32>
    %c6_i32_99 = arith.constant 6 : i32
    %c8_i32_100 = arith.constant 8 : i32
    %400 = arith.muli %c6_i32_99, %c8_i32_100 : i32
    %401 = tpu.assume_multiple %400, 8 : i32
    %402 = arith.index_cast %401 : i32 to index
    %c0_101 = arith.constant 0 : index
    %403 = vector.load %arg11[%402, %c0_101] : memref<64x128xf32, #tpu.memory_space<vmem>>, vector<8x128xf32>
    %404 = arith.truncf %393 : vector<8x32xf32> to vector<8x32xbf16>
    %cst_102 = arith.constant dense<0.000000e+00> : vector<8x128xf32>
    %405 = tpu.matmul %404, %225, %cst_102 {dimension_numbers = #tpu.dot_dimension_numbers<[1], [0], [0], [1], [0, 0, 1, 1], [], []>} : vector<8x32xbf16>, vector<32x128xbf16>, vector<8x128xf32> -> vector<8x128xf32>
    %406 = arith.addf %403, %405 : vector<8x128xf32>
    %407 = vector.extract_strided_slice %406 {offsets = [0, 0], sizes = [8, 96], strides = [1, 1]} : vector<8x128xf32> to vector<8x96xf32>
    %408 = arith.negf %407 : vector<8x96xf32>
    %409 = math.exp %408 : vector<8x96xf32>
    %cst_103 = arith.constant 1.000000e+00 : f32
    %410 = vector.broadcast %cst_103 : f32 to vector<8x96xf32>
    %411 = arith.addf %410, %409 : vector<8x96xf32>
    %412 = arith.divf %410, %411 : vector<8x96xf32>
    %413 = vector.extract_strided_slice %406 {offsets = [0, 96], sizes = [8, 32], strides = [1, 1]} : vector<8x128xf32> to vector<8x32xf32>
    %414 = math.tanh %413 : vector<8x32xf32>
    %415 = vector.extract_strided_slice %412 {offsets = [0, 0], sizes = [8, 32], strides = [1, 1]} : vector<8x96xf32> to vector<8x32xf32>
    %416 = vector.extract_strided_slice %412 {offsets = [0, 32], sizes = [8, 32], strides = [1, 1]} : vector<8x96xf32> to vector<8x32xf32>
    %417 = vector.extract_strided_slice %412 {offsets = [0, 64], sizes = [8, 32], strides = [1, 1]} : vector<8x96xf32> to vector<8x32xf32>
    %418 = arith.mulf %416, %391 : vector<8x32xf32>
    %419 = arith.mulf %415, %414 : vector<8x32xf32>
    %420 = arith.addf %418, %419 : vector<8x32xf32>
    %421 = math.tanh %420 : vector<8x32xf32>
    %422 = arith.mulf %417, %421 : vector<8x32xf32>
    %c1_i32_104 = arith.constant 1 : i32
    %423 = arith.addi %c6_i32_99, %c1_i32_104 : i32
    %424 = vector.broadcast %423 : i32 to vector<8x1xi32>
    %425 = arith.cmpi eq, %0, %424 : vector<8x1xi32>
    %426 = vector.shape_cast %425 : vector<8x1xi1> to vector<8x1xi1>
    %427 = vector.broadcast %426 : vector<8x1xi1> to vector<8x32xi1>
    %428 = arith.select %427, %422, %399 : vector<8x32xi1>, vector<8x32xf32>
    %c7_i32_105 = arith.constant 7 : i32
    %c8_i32_106 = arith.constant 8 : i32
    %429 = arith.muli %c7_i32_105, %c8_i32_106 : i32
    %430 = tpu.assume_multiple %429, 8 : i32
    %431 = arith.index_cast %430 : i32 to index
    %c0_107 = arith.constant 0 : index
    %432 = vector.load %arg11[%431, %c0_107] : memref<64x128xf32, #tpu.memory_space<vmem>>, vector<8x128xf32>
    %433 = arith.truncf %422 : vector<8x32xf32> to vector<8x32xbf16>
    %cst_108 = arith.constant dense<0.000000e+00> : vector<8x128xf32>
    %434 = tpu.matmul %433, %225, %cst_108 {dimension_numbers = #tpu.dot_dimension_numbers<[1], [0], [0], [1], [0, 0, 1, 1], [], []>} : vector<8x32xbf16>, vector<32x128xbf16>, vector<8x128xf32> -> vector<8x128xf32>
    %435 = arith.addf %432, %434 : vector<8x128xf32>
    %436 = vector.extract_strided_slice %435 {offsets = [0, 0], sizes = [8, 96], strides = [1, 1]} : vector<8x128xf32> to vector<8x96xf32>
    %437 = arith.negf %436 : vector<8x96xf32>
    %438 = math.exp %437 : vector<8x96xf32>
    %cst_109 = arith.constant 1.000000e+00 : f32
    %439 = vector.broadcast %cst_109 : f32 to vector<8x96xf32>
    %440 = arith.addf %439, %438 : vector<8x96xf32>
    %441 = arith.divf %439, %440 : vector<8x96xf32>
    %442 = vector.extract_strided_slice %435 {offsets = [0, 96], sizes = [8, 32], strides = [1, 1]} : vector<8x128xf32> to vector<8x32xf32>
    %443 = math.tanh %442 : vector<8x32xf32>
    %444 = vector.extract_strided_slice %441 {offsets = [0, 0], sizes = [8, 32], strides = [1, 1]} : vector<8x96xf32> to vector<8x32xf32>
    %445 = vector.extract_strided_slice %441 {offsets = [0, 32], sizes = [8, 32], strides = [1, 1]} : vector<8x96xf32> to vector<8x32xf32>
    %446 = vector.extract_strided_slice %441 {offsets = [0, 64], sizes = [8, 32], strides = [1, 1]} : vector<8x96xf32> to vector<8x32xf32>
    %447 = arith.mulf %445, %420 : vector<8x32xf32>
    %448 = arith.mulf %444, %443 : vector<8x32xf32>
    %449 = arith.addf %447, %448 : vector<8x32xf32>
    %450 = math.tanh %449 : vector<8x32xf32>
    %451 = arith.mulf %446, %450 : vector<8x32xf32>
    %c1_i32_110 = arith.constant 1 : i32
    %452 = arith.addi %c7_i32_105, %c1_i32_110 : i32
    %453 = vector.broadcast %452 : i32 to vector<8x1xi32>
    %454 = arith.cmpi eq, %0, %453 : vector<8x1xi32>
    %455 = vector.shape_cast %454 : vector<8x1xi1> to vector<8x1xi1>
    %456 = vector.broadcast %455 : vector<8x1xi1> to vector<8x32xi1>
    %457 = arith.select %456, %451, %428 : vector<8x32xi1>, vector<8x32xf32>
    %c8_i32_111 = arith.constant 8 : i32
    %458 = arith.truncf %457 : vector<8x32xf32> to vector<8x32xbf16>
    %c0_112 = arith.constant 0 : index
    %c0_113 = arith.constant 0 : index
    %459 = vector.load %arg8[%c0_112, %c0_113] : memref<32x128xbf16, #tpu.memory_space<vmem>>, vector<32x128xbf16>
    %cst_114 = arith.constant dense<0.000000e+00> : vector<8x128xf32>
    %460 = tpu.matmul %458, %459, %cst_114 {dimension_numbers = #tpu.dot_dimension_numbers<[1], [0], [0], [1], [0, 0, 1, 1], [], []>} : vector<8x32xbf16>, vector<32x128xbf16>, vector<8x128xf32> -> vector<8x128xf32>
    %c0_115 = arith.constant 0 : index
    %c0_116 = arith.constant 0 : index
    %461 = vector.load %arg9[%c0_115, %c0_116] : memref<1x128xf32, #tpu.memory_space<vmem>>, vector<1x128xf32>
    %462 = vector.broadcast %461 : vector<1x128xf32> to vector<8x128xf32>
    %463 = arith.addf %460, %462 : vector<8x128xf32>
    %464 = arith.negf %463 : vector<8x128xf32>
    %465 = math.exp %464 : vector<8x128xf32>
    %cst_117 = arith.constant 1.000000e+00 : f32
    %466 = vector.broadcast %cst_117 : f32 to vector<8x128xf32>
    %467 = arith.addf %466, %465 : vector<8x128xf32>
    %468 = arith.divf %466, %467 : vector<8x128xf32>
    %c0_118 = arith.constant 0 : index
    %c0_119 = arith.constant 0 : index
    %469 = vector.load %arg10[%c0_118, %c0_119] : memref<8x128xf32, #tpu.memory_space<vmem>>, vector<8x128xf32>
    tpu.vector_store %arg10[%c0_118, %c0_119], %468 {strides = array<i32>} : memref<8x128xf32, #tpu.memory_space<vmem>>, vector<8x128xf32>,
    return
  }
}

</mosaic_0001>

<bundles_post_ra>
// kernel: model_lstm_forward.1
= control target key start
LH: loop header
LB: loop body
LE: loop exit
PB: predicated region body
PF: predicated region fallthrough
CT: control target
= control target key end

     0   :  { %v1652_v2 = vmov 0   ;;  %vm85_vm0 = vcmask 261120   ;;  %s1653_s23 = smov 32   ;;  %s1654_s24 = smov 64   ;;  %s2029_s2 = inlined_call_operand.vmem [shape: bf16[32,128], index: 2, kind: input, shape index: {}]   ;;  %s2030_s3 = inlined_call_operand.vmem [shape: bf16[32,128], index: 3, kind: input, shape index: {}]   ;;  %s2031_s4 = inlined_call_operand.vmem [shape: f32[1,128], index: 4, kind: input, shape index: {}]   ;;  %s2032_s1 = inlined_call_operand.vmem [shape: bf16[64,32], index: 1, kind: input, shape index: {}]   ;;  %s2033_s5 = inlined_call_operand.vmem [shape: bf16[32,128], index: 5, kind: input, shape index: {}]   ;;  %s2034_s7 = inlined_call_operand.vmem [shape: f32[1,128], index: 7, kind: input, shape index: {}]   ;;  %s2035_s6 = inlined_call_operand.vmem [shape: bf16[32,128], index: 6, kind: input, shape index: {}]   ;;  %s2036_s0 = inlined_call_operand.vmem [shape: s32[8,1], index: 0, kind: input, shape index: {}]   ;;  %s2037_s8 = inlined_call_operand.vmem [shape: bf16[32,128], index: 8, kind: input, shape index: {}]   ;;  %s2038_s9 = inlined_call_operand.vmem [shape: f32[1,128], index: 9, kind: input, shape index: {}]   ;;  %s2039_s10 = inlined_call_operand.vmem [shape: f32[8,128], index: 10, kind: output, shape index: {}]  }
   0x1   :  { %v1497_v0 = vld [vmem:[%s2029_s2 + $0x8] sm:$0xff]  ;;  %1513 = vset.pattern.permute.xlu0 %v1652_v2  ;;  %1514 = vset.pattern.permute.xlu1 %v1652_v2  ;;  %v1496_v3 = vld [vmem:[%s2029_s2] sm:$0xff] }
   0x2   :  { %v1716_v1 = vld [vmem:[%s2030_s3 + $0x8] sm:$0xff]  ;;  %1515 = vset.pattern.permute.xlu2 %v1652_v2  ;;  %104 = vmatpush.bf16.msra.mxu0 %v1497_v0  ;;  %v1728_v4 = vld [vmem:[%s2030_s3] sm:$0xff] }
   0x3   :  { %161 = vmatpush.bf16.msra.mxu1 %v1716_v1  ;;  %228 = vmatpush.bf16.msra.mxu2 %v1716_v1  ;;  %v1492_v5 = vld [vmem:[%s2032_s1] sm:$0xff]  ;;  %v1493_v63 = vld [vmem:[%s2032_s1 + $0x8] sm:$0xff] }
   0x4   :  { %295 = vmatpush.bf16.msra.mxu3 %v1716_v1  ;;  %v1751_v6 = vld [vmem:[%s2031_s4] ss:$0 sm:$0xff] }
   0x6   :  { %105 = vmatpush.bf16.msra.mxu0 %v1496_v3 }
   0x7   :  { %162 = vmatpush.bf16.msra.mxu1 %v1728_v4  ;;  %229 = vmatpush.bf16.msra.mxu2 %v1728_v4 }
   0x8   :  { %296 = vmatpush.bf16.msra.mxu3 %v1728_v4 }
   0x9   :  { %1404 = vmatmul.msk.bf16.vlgmr.msra.gmra.mxu0 %vm85_vm0, %v1492_v5 }
   0xa   :  { %163 = vmatmul.bf16.vlgmr.msra.gmra.mxu1 %v1652_v2 }
   0xb   :  { %362 = vmatpush.bf16.msrb.mxu1 %v1716_v1  ;;  %429 = vmatpush.bf16.msrb.mxu2 %v1716_v1 }
   0xc   :  { %496 = vmatpush.bf16.msrb.mxu3 %v1716_v1 }
   0xf   :  { %363 = vmatpush.bf16.msrb.mxu1 %v1728_v4  ;;  %430 = vmatpush.bf16.msrb.mxu2 %v1728_v4 }
  0x10   :  { %497 = vmatpush.bf16.msrb.mxu3 %v1728_v4 }
  0x13   :  { %563 = vmatpush.bf16.msra.mxu1 %v1716_v1 }
  0x17   :  { %564 = vmatpush.bf16.msra.mxu1 %v1728_v4 }
  0x19   :  { %1405 = vmatmul.msk.bf16.gmra.mxu0 %vm85_vm0, %v1493_v63 }
  0x86   :  { %v107_v7 = vpop.f32.mrf.mxu0 }
  0x87   :  { %v164_v8 = vpop.f32.mrf.mxu1  ;;  %v108_v9 = vadd.f32 %v1751_v6, %v107_v7 }
  0x89   :  { %v168_v10 = vadd.f32 %v164_v8, %v108_v9 }
  0x8b   :  { %1519 = vtanh.f32 %v168_v10  ;;  %v1416_v13 = vmul.f32 -1.442695, %v168_v10 }
  0x8d   :  { %1521 = vpow2.f32 %v1416_v13 }
  0x8e   :  { %v109_v38 = vpop.f32.mrf.mxu0 }
  0x8f   :  { %v166_v11 = vpop.f32.mrf.mxu1  ;;  %v110_v39 = vadd.f32 %v1751_v6, %v109_v38 }
  0x91   :  { %v1520_v12 = vpop.eup %1519 }
  0x92   :  { %191 = vrot.lane.b32.xlu0 %v1520_v12, %s1653_s23 }
  0x93   :  { %v1522_v14 = vpop.eup %1521 }
  0x94   :  { %v172_v15 = vadd.f32 1.0, %v1522_v14 }
  0x96   :  { %1523 = vrcp.f32 %v172_v15  ;;  %v184_v21 = vand.u32 2147483648, %v172_v15  ;;  %vm178_vm2 = vweird.f32 %v172_v15  ;;  %v182_v22 = vand.u32 2147483647, %v172_v15  ;;  %v112_v8 = vpop.f32.mrf.mxu0 }
  0x97   :  { %v113_v9 = vadd.f32 %v1751_v6, %v112_v8 }
  0x98   :  { %v185_v24 = vor.u32 1.1754944e-38, %v184_v21  ;;  %vm183_vm4 = vcmp.eq.f32.partialorder %v182_v22, 8.507059e+37 }
  0x9c   :  { %v1524_v16 = vpop.eup %1523 }
  0x9d   :  { %v174_v17 = vmul.f32 %v1524_v16, %v172_v15  ;;  %vm179_vm1 = vweird.f32 %v1524_v16 }
  0x9e   :  { %vm180_vm3 = vmor %vm178_vm2, %vm179_vm1 }
  0x9f   :  { %v175_v18 = vsub.f32 1.0, %v174_v17 }
  0xa1   :  { %v176_v19 = vmul.f32 %v1524_v16, %v175_v18 }
  0xa3   :  { %v177_v20 = vadd.f32 %v1524_v16, %v176_v19 }
  0xa5   :  { %v181_v23 = vsel %vm180_vm3, %v1524_v16, %v177_v20 }
  0xa6   :  { %v186_v26 = vsel %vm183_vm4, %v185_v24, %v181_v23 }
  0xa7   :  { %v189_v28 = vmul.f32 0.0, %v186_v26 }
 0x104   :  { %v192_v25 = vpop.permute.xlu0 %191 }
 0x105   :  { %v194_v27 = vmul.f32 %v192_v25, %v186_v26 }
 0x107   :  { %196 = vrot.lane.b32.xlu0 %v194_v27, %s1653_s23 }
 0x179   :  { %v197_v29 = vpop.permute.xlu0 %196 }
 0x17a   :  { %v199_v30 = vadd.f32 %v197_v29, %v189_v28 }
 0x17c   :  { %1525 = vtanh.f32 %v199_v30 }
 0x182   :  { %v1526_v31 = vpop.eup %1525 }
 0x183   :  { %202 = vrot.lane.b32.xlu1 %v1526_v31, %s1653_s23 }
 0x1f5   :  { %v203_v32 = vpop.permute.xlu1 %202 }
 0x1f6   :  { %v205_v33 = vmul.f32 %v203_v32, %v186_v26 }
 0x1f8   :  { %v1757_v34 = vpack.c.bf16 %v205_v33, %v205_v33 }
 0x1fa   :  { %v215_v35 = vunpack.c.l.b16 %v1757_v34 }
 0x1fc   :  { %v216_v36 = vpack.c.b16 %v215_v35, %v215_v35 }
 0x1fe   :  { %217 = vrot.lane.b32.xlu1 %v216_v36, %s1654_s24 }
 0x270   :  { %v218_v37 = vpop.permute.xlu1 %217 }
 0x271   :  { %1417 = vmatmul.msk.bf16.vlgmr.msra.gmra.mxu2 %vm85_vm0, %v218_v37 }
 0x272   :  { %630 = vmatpush.bf16.msra.mxu2 %v1716_v1 }
 0x276   :  { %631 = vmatpush.bf16.msra.mxu2 %v1728_v4 }
 0x2f4   :  { %v231_v40 = vpop.f32.mrf.mxu2 }
 0x2f5   :  { %v235_v41 = vadd.f32 %v231_v40, %v110_v39  ;;  %v114_v40 = vpop.f32.mrf.mxu0 }
 0x2f7   :  { %1527 = vtanh.f32 %v235_v41  ;;  %v1418_v44 = vmul.f32 -1.442695, %v235_v41  ;;  %v115_v41 = vadd.f32 %v1751_v6, %v114_v40 }
 0x2f9   :  { %1529 = vpow2.f32 %v1418_v44 }
 0x2fc   :  { %v233_v42 = vpop.f32.mrf.mxu2 }
 0x2fd   :  { %v1528_v43 = vpop.eup %1527 }
 0x2fe   :  { %258 = vrot.lane.b32.xlu2 %v1528_v43, %s1653_s23 }
 0x2ff   :  { %v1530_v45 = vpop.eup %1529 }
 0x300   :  { %v239_v46 = vadd.f32 1.0, %v1530_v45 }
 0x302   :  { %1531 = vrcp.f32 %v239_v46  ;;  %v251_v52 = vand.u32 2147483648, %v239_v46  ;;  %vm245_vm6 = vweird.f32 %v239_v46  ;;  %v249_v53 = vand.u32 2147483647, %v239_v46 }
 0x304   :  { %v252_v55 = vor.u32 1.1754944e-38, %v251_v52  ;;  %vm250_vm8 = vcmp.eq.f32.partialorder %v249_v53, 8.507059e+37 }
 0x308   :  { %v1532_v47 = vpop.eup %1531 }
 0x309   :  { %v241_v48 = vmul.f32 %v1532_v47, %v239_v46  ;;  %vm246_vm5 = vweird.f32 %v1532_v47 }
 0x30a   :  { %vm247_vm7 = vmor %vm245_vm6, %vm246_vm5 }
 0x30b   :  { %v242_v49 = vsub.f32 1.0, %v241_v48 }
 0x30d   :  { %v243_v50 = vmul.f32 %v1532_v47, %v242_v49 }
 0x30f   :  { %v244_v51 = vadd.f32 %v1532_v47, %v243_v50 }
 0x311   :  { %v248_v54 = vsel %vm247_vm7, %v1532_v47, %v244_v51 }
 0x312   :  { %v253_v57 = vsel %vm250_vm8, %v252_v55, %v248_v54 }
 0x313   :  { %v256_v59 = vmul.f32 %v253_v57, %v199_v30 }
 0x358   :  { %v259_v56 = vpop.permute.xlu2 %258 }
 0x359   :  { %v261_v58 = vmul.f32 %v259_v56, %v253_v57 }
 0x35b   :  { %263 = vrot.lane.b32.xlu2 %v261_v58, %s1653_s23 }
 0x3b5   :  { %v264_v60 = vpop.permute.xlu2 %263 }
 0x3b6   :  { %v266_v61 = vadd.f32 %v264_v60, %v256_v59 }
 0x3b8   :  { %1533 = vtanh.f32 %v266_v61 }
 0x3be   :  { %v1534_v62 = vpop.eup %1533 }
 0x3bf   :  { %269 = vrot.lane.b32.xlu0 %v1534_v62, %s1653_s23 }
 0x431   :  { %v270_v0 = vpop.permute.xlu0 %269 }
 0x432   :  { %v272_v1 = vmul.f32 %v270_v0, %v253_v57 }
 0x434   :  { %v1772_v3 = vpack.c.bf16 %v272_v1, %v272_v1  ;;  %v1494_v1 = vld [vmem:[%s2032_s1 + $0x10] sm:$0xff] }
 0x435   :  { %1406 = vmatmul.msk.bf16.gmra.mxu0 %vm85_vm0, %v1494_v1 }
 0x436   :  { %v282_v4 = vunpack.c.l.b16 %v1772_v3 }
 0x438   :  { %v283_v5 = vpack.c.b16 %v282_v4, %v282_v4 }
 0x43a   :  { %284 = vrot.lane.b32.xlu1 %v283_v5, %s1654_s24 }
 0x4ac   :  { %v285_v7 = vpop.permute.xlu1 %284 }
 0x4ad   :  { %1419 = vmatmul.msk.bf16.vlgmr.msra.gmra.mxu3 %vm85_vm0, %v285_v7 }
 0x530   :  { %v298_v10 = vpop.f32.mrf.mxu3 }
 0x531   :  { %v302_v11 = vadd.f32 %v298_v10, %v113_v9 }
 0x533   :  { %1535 = vtanh.f32 %v302_v11  ;;  %v1420_v14 = vmul.f32 -1.442695, %v302_v11  ;;  %v117_v11 = vpop.f32.mrf.mxu0 }
 0x535   :  { %1537 = vpow2.f32 %v1420_v14 }
 0x538   :  { %v300_v12 = vpop.f32.mrf.mxu3 }
 0x539   :  { %v1536_v13 = vpop.eup %1535  ;;  %v118_v12 = vadd.f32 %v1751_v6, %v117_v11  ;;  %v1495_v11 = vld [vmem:[%s2032_s1 + $0x18] sm:$0xff] }
 0x53a   :  { %325 = vrot.lane.b32.xlu2 %v1536_v13, %s1653_s23  ;;  %1407 = vmatmul.msk.bf16.gmra.mxu0 %vm85_vm0, %v1495_v11 }
 0x53b   :  { %v1538_v15 = vpop.eup %1537 }
 0x53c   :  { %v306_v16 = vadd.f32 1.0, %v1538_v15 }
 0x53e   :  { %1539 = vrcp.f32 %v306_v16  ;;  %v318_v22 = vand.u32 2147483648, %v306_v16  ;;  %vm312_vm10 = vweird.f32 %v306_v16  ;;  %v316_v23 = vand.u32 2147483647, %v306_v16 }
 0x540   :  { %v319_v25 = vor.u32 1.1754944e-38, %v318_v22  ;;  %vm317_vm12 = vcmp.eq.f32.partialorder %v316_v23, 8.507059e+37 }
 0x544   :  { %v1540_v17 = vpop.eup %1539 }
 0x545   :  { %v308_v18 = vmul.f32 %v1540_v17, %v306_v16  ;;  %vm313_vm9 = vweird.f32 %v1540_v17 }
 0x546   :  { %vm314_vm11 = vmor %vm312_vm10, %vm313_vm9  ;;  %vm211_vm10 = vcmask 257024  }
 0x547   :  { %v309_v19 = vsub.f32 1.0, %v308_v18 }
 0x549   :  { %v310_v20 = vmul.f32 %v1540_v17, %v309_v19 }
 0x54b   :  { %v311_v21 = vadd.f32 %v1540_v17, %v310_v20 }
 0x54d   :  { %v315_v24 = vsel %vm314_vm11, %v1540_v17, %v311_v21 }
 0x54e   :  { %v320_v27 = vsel %vm317_vm12, %v319_v25, %v315_v24 }
 0x54f   :  { %v323_v29 = vmul.f32 %v320_v27, %v266_v61 }
 0x594   :  { %v326_v26 = vpop.permute.xlu2 %325 }
 0x595   :  { %v328_v28 = vmul.f32 %v326_v26, %v320_v27 }
 0x597   :  { %330 = vrot.lane.b32.xlu0 %v328_v28, %s1653_s23 }
 0x609   :  { %v331_v30 = vpop.permute.xlu0 %330 }
 0x60a   :  { %v333_v31 = vadd.f32 %v331_v30, %v323_v29 }
 0x60c   :  { %1541 = vtanh.f32 %v333_v31 }
 0x612   :  { %v1542_v32 = vpop.eup %1541 }
 0x613   :  { %336 = vrot.lane.b32.xlu1 %v1542_v32, %s1653_s23 }
 0x685   :  { %v337_v33 = vpop.permute.xlu1 %336 }
 0x686   :  { %v339_v35 = vmul.f32 %v337_v33, %v320_v27 }
 0x688   :  { %v1781_v36 = vpack.c.bf16 %v339_v35, %v339_v35 }
 0x68a   :  { %v349_v37 = vunpack.c.l.b16 %v1781_v36 }
 0x68c   :  { %v350_v38 = vpack.c.b16 %v349_v37, %v349_v37 }
 0x68e   :  { %351 = vrot.lane.b32.xlu2 %v350_v38, %s1654_s24 }
 0x6e8   :  { %v352_v39 = vpop.permute.xlu2 %351 }
 0x6e9   :  { %1421 = vmatmul.msk.bf16.vlgmr.msrb.gmra.mxu1 %vm85_vm0, %v352_v39 }
 0x766   :  { %v365_v42 = vpop.f32.mrf.mxu1 }
 0x767   :  { %v369_v43 = vadd.f32 %v365_v42, %v115_v41 }
 0x769   :  { %1543 = vtanh.f32 %v369_v43  ;;  %v1422_v46 = vmul.f32 -1.442695, %v369_v43 }
 0x76b   :  { %1545 = vpow2.f32 %v1422_v46 }
 0x76e   :  { %v367_v44 = vpop.f32.mrf.mxu1 }
 0x76f   :  { %v1544_v45 = vpop.eup %1543  ;;  %v119_v44 = vpop.f32.mrf.mxu0 }
 0x770   :  { %392 = vrot.lane.b32.xlu0 %v1544_v45, %s1653_s23  ;;  %v120_v45 = vadd.f32 %v1751_v6, %v119_v44 }
 0x771   :  { %v1546_v47 = vpop.eup %1545 }
 0x772   :  { %v373_v48 = vadd.f32 1.0, %v1546_v47 }
 0x774   :  { %1547 = vrcp.f32 %v373_v48  ;;  %v385_v54 = vand.u32 2147483648, %v373_v48  ;;  %vm379_vm14 = vweird.f32 %v373_v48  ;;  %v383_v55 = vand.u32 2147483647, %v373_v48 }
 0x776   :  { %v386_v57 = vor.u32 1.1754944e-38, %v385_v54  ;;  %vm384_vm1 = vcmp.eq.f32.partialorder %v383_v55, 8.507059e+37 }
 0x77a   :  { %v1548_v49 = vpop.eup %1547 }
 0x77b   :  { %v375_v50 = vmul.f32 %v1548_v49, %v373_v48  ;;  %vm380_vm13 = vweird.f32 %v1548_v49 }
 0x77c   :  { %vm381_vm15 = vmor %vm379_vm14, %vm380_vm13 }
 0x77d   :  { %v376_v51 = vsub.f32 1.0, %v375_v50 }
 0x77f   :  { %v377_v52 = vmul.f32 %v1548_v49, %v376_v51 }
 0x781   :  { %v378_v53 = vadd.f32 %v1548_v49, %v377_v52 }
 0x783   :  { %v382_v56 = vsel %vm381_vm15, %v1548_v49, %v378_v53 }
 0x784   :  { %v387_v59 = vsel %vm384_vm1, %v386_v57, %v382_v56 }
 0x785   :  { %v390_v61 = vmul.f32 %v387_v59, %v333_v31 }
 0x7e2   :  { %v393_v58 = vpop.permute.xlu0 %392 }
 0x7e3   :  { %v395_v60 = vmul.f32 %v393_v58, %v387_v59 }
 0x7e5   :  { %397 = vrot.lane.b32.xlu1 %v395_v60, %s1653_s23 }
 0x857   :  { %v398_v62 = vpop.permute.xlu1 %397 }
 0x858   :  { %v400_v63 = vadd.f32 %v398_v62, %v390_v61 }
 0x85a   :  { %1549 = vtanh.f32 %v400_v63 }
 0x860   :  { %v1550_v0 = vpop.eup %1549 }
 0x861   :  { %403 = vrot.lane.b32.xlu2 %v1550_v0, %s1653_s23 }
 0x8bb   :  { %v404_v4 = vpop.permute.xlu2 %403 }
 0x8bc   :  { %v406_v5 = vmul.f32 %v404_v4, %v387_v59 }
 0x8be   :  { %v1794_v7 = vpack.c.bf16 %v406_v5, %v406_v5 }
 0x8c0   :  { %v416_v8 = vunpack.c.l.b16 %v1794_v7 }
 0x8c2   :  { %v417_v9 = vpack.c.b16 %v416_v8, %v416_v8 }
 0x8c4   :  { %418 = vrot.lane.b32.xlu0 %v417_v9, %s1654_s24 }
 0x936   :  { %v419_v10 = vpop.permute.xlu0 %418 }
 0x937   :  { %1423 = vmatmul.msk.bf16.vlgmr.msrb.gmra.mxu2 %vm85_vm0, %v419_v10  ;;  %v1504_v10 = vld [vmem:[%s2033_s5] sm:$0xff] }
 0x9ba   :  { %v432_v13 = vpop.f32.mrf.mxu2 }
 0x9bb   :  { %v436_v14 = vadd.f32 %v432_v13, %v118_v12 }
 0x9bd   :  { %1551 = vtanh.f32 %v436_v14  ;;  %v1424_v17 = vmul.f32 -1.442695, %v436_v14 }
 0x9bf   :  { %1553 = vpow2.f32 %v1424_v17 }
 0x9c2   :  { %v434_v15 = vpop.f32.mrf.mxu2 }
 0x9c3   :  { %v1552_v16 = vpop.eup %1551 }
 0x9c4   :  { %459 = vrot.lane.b32.xlu1 %v1552_v16, %s1653_s23 }
 0x9c5   :  { %v1554_v18 = vpop.eup %1553 }
 0x9c6   :  { %v440_v19 = vadd.f32 1.0, %v1554_v18  ;;  %v1839_v18 = vld [vmem:[%s2035_s6 + $0x8] sm:$0xff] }
 0x9c7   :  { %802 = vmatpush.bf16.msrb.mxu1 %v1839_v18  ;;  %868 = vmatpush.bf16.msrb.mxu2 %v1839_v18 }
 0x9c8   :  { %1555 = vrcp.f32 %v440_v19  ;;  %v452_v25 = vand.u32 2147483648, %v440_v19  ;;  %vm446_vm3 = vweird.f32 %v440_v19  ;;  %v450_v26 = vand.u32 2147483647, %v440_v19  ;;  %934 = vmatpush.bf16.msrb.mxu0 %v1839_v18 }
 0x9ca   :  { %v453_v28 = vor.u32 1.1754944e-38, %v452_v25  ;;  %vm451_vm5 = vcmp.eq.f32.partialorder %v450_v26, 8.507059e+37 }
 0x9ce   :  { %v1556_v20 = vpop.eup %1555 }
 0x9cf   :  { %v442_v21 = vmul.f32 %v1556_v20, %v440_v19  ;;  %vm447_vm2 = vweird.f32 %v1556_v20  ;;  %v1845_v19 = vld [vmem:[%s2035_s6] sm:$0xff] }
 0x9d0   :  { %vm448_vm4 = vmor %vm446_vm3, %vm447_vm2  ;;  %803 = vmatpush.bf16.msrb.mxu1 %v1845_v19  ;;  %869 = vmatpush.bf16.msrb.mxu2 %v1845_v19 }
 0x9d1   :  { %v443_v22 = vsub.f32 1.0, %v442_v21  ;;  %935 = vmatpush.bf16.msrb.mxu0 %v1845_v19  ;;  %v122_v21 = vpop.f32.mrf.mxu0 }
 0x9d3   :  { %v444_v23 = vmul.f32 %v1556_v20, %v443_v22  ;;  %v123_v22 = vadd.f32 %v1751_v6, %v122_v21 }
 0x9d5   :  { %v445_v24 = vadd.f32 %v1556_v20, %v444_v23  ;;  %1132 = vmatpush.bf16.msra.mxu0 %v1839_v18 }
 0x9d7   :  { %v449_v27 = vsel %vm448_vm4, %v1556_v20, %v445_v24 }
 0x9d8   :  { %v454_v30 = vsel %vm451_vm5, %v453_v28, %v449_v27  ;;  %v1865_v27 = vld [vmem:[%s2034_s7] ss:$0 sm:$0xff] }
 0x9d9   :  { %v457_v32 = vmul.f32 %v454_v30, %v400_v63  ;;  %1133 = vmatpush.bf16.msra.mxu0 %v1845_v19 }
 0xa36   :  { %v460_v29 = vpop.permute.xlu1 %459 }
 0xa37   :  { %v462_v31 = vmul.f32 %v460_v29, %v454_v30 }
 0xa39   :  { %464 = vrot.lane.b32.xlu2 %v462_v31, %s1653_s23 }
 0xa93   :  { %v465_v33 = vpop.permute.xlu2 %464 }
 0xa94   :  { %v467_v35 = vadd.f32 %v465_v33, %v457_v32 }
 0xa96   :  { %1557 = vtanh.f32 %v467_v35 }
 0xa9c   :  { %v1558_v37 = vpop.eup %1557 }
 0xa9d   :  { %470 = vrot.lane.b32.xlu0 %v1558_v37, %s1653_s23 }
 0xb0f   :  { %v471_v38 = vpop.permute.xlu0 %470 }
 0xb10   :  { %v473_v39 = vmul.f32 %v471_v38, %v454_v30 }
 0xb12   :  { %v1803_v40 = vpack.c.bf16 %v473_v39, %v473_v39 }
 0xb14   :  { %v483_v41 = vunpack.c.l.b16 %v1803_v40 }
 0xb16   :  { %v484_v42 = vpack.c.b16 %v483_v41, %v483_v41 }
 0xb18   :  { %485 = vrot.lane.b32.xlu1 %v484_v42, %s1654_s24 }
 0xb8a   :  { %v486_v43 = vpop.permute.xlu1 %485 }
 0xb8b   :  { %1425 = vmatmul.msk.bf16.vlgmr.msrb.gmra.mxu3 %vm85_vm0, %v486_v43 }
 0xc0e   :  { %v499_v46 = vpop.f32.mrf.mxu3 }
 0xc0f   :  { %v503_v47 = vadd.f32 %v499_v46, %v120_v45 }
 0xc11   :  { %1559 = vtanh.f32 %v503_v47  ;;  %v1426_v50 = vmul.f32 -1.442695, %v503_v47 }
 0xc13   :  { %1561 = vpow2.f32 %v1426_v50 }
 0xc16   :  { %v501_v48 = vpop.f32.mrf.mxu3 }
 0xc17   :  { %v1560_v49 = vpop.eup %1559 }
 0xc18   :  { %526 = vrot.lane.b32.xlu2 %v1560_v49, %s1653_s23 }
 0xc19   :  { %v1562_v51 = vpop.eup %1561 }
 0xc1a   :  { %v507_v52 = vadd.f32 1.0, %v1562_v51 }
 0xc1c   :  { %1563 = vrcp.f32 %v507_v52  ;;  %v519_v58 = vand.u32 2147483648, %v507_v52  ;;  %vm513_vm7 = vweird.f32 %v507_v52  ;;  %v517_v59 = vand.u32 2147483647, %v507_v52 }
 0xc1e   :  { %v520_v61 = vor.u32 1.1754944e-38, %v519_v58  ;;  %vm518_vm9 = vcmp.eq.f32.partialorder %v517_v59, 8.507059e+37 }
 0xc22   :  { %v1564_v53 = vpop.eup %1563 }
 0xc23   :  { %v509_v54 = vmul.f32 %v1564_v53, %v507_v52  ;;  %vm514_vm6 = vweird.f32 %v1564_v53 }
 0xc24   :  { %vm515_vm8 = vmor %vm513_vm7, %vm514_vm6 }
 0xc25   :  { %v510_v55 = vsub.f32 1.0, %v509_v54 }
 0xc27   :  { %v511_v56 = vmul.f32 %v1564_v53, %v510_v55 }
 0xc29   :  { %v512_v57 = vadd.f32 %v1564_v53, %v511_v56 }
 0xc2b   :  { %v516_v60 = vsel %vm515_vm8, %v1564_v53, %v512_v57 }
 0xc2c   :  { %v521_v63 = vsel %vm518_vm9, %v520_v61, %v516_v60 }
 0xc2d   :  { %v524_v1 = vmul.f32 %v521_v63, %v467_v35 }
 0xc72   :  { %v527_v62 = vpop.permute.xlu2 %526 }
 0xc73   :  { %v529_v0 = vmul.f32 %v527_v62, %v521_v63 }
 0xc75   :  { %531 = vrot.lane.b32.xlu0 %v529_v0, %s1653_s23 }
 0xc7d   :  { %208 = vrot.lane.b32.xlu0 %v1757_v34, %s1654_s24  ;;  %v1505_v34 = vld [vmem:[%s2033_s5 + $0x8] sm:$0xff] }
 0xc7e   :  { %748 = vmatpush.bf16.msra.mxu3 %v1505_v34 }
 0xc82   :  { %749 = vmatpush.bf16.msra.mxu3 %v1504_v10 }
 0xce7   :  { %v532_v4 = vpop.permute.xlu0 %531 }
 0xce8   :  { %v1813_v5 = vadd.f32 %v532_v4, %v524_v1 }
 0xcea   :  { %1565 = vtanh.f32 %v1813_v5 }
 0xcef   :  { %v209_v8 = vpop.permute.xlu0 %208 }
 0xcf0   :  { %v1566_v9 = vpop.eup %1565  ;;  %212 = vst.msk [vmem:[#allocation3] sm:$0xf] %vm211_vm10, %v209_v8 }
 0xcf1   :  { %537 = vrot.lane.b32.xlu1 %v1566_v9, %s1653_s23 }
 0xcf9   :  { %275 = vrot.lane.b32.xlu1 %v1772_v3, %s1654_s24 }
 0xd63   :  { %v538_v12 = vpop.permute.xlu1 %537 }
 0xd64   :  { %v540_v13 = vmul.f32 %v538_v12, %v521_v63 }
 0xd66   :  { %v1830_v14 = vpack.c.bf16 %v540_v13, %v540_v13 }
 0xd68   :  { %v550_v3 = vunpack.c.l.b16 %v1830_v14 }
 0xd6a   :  { %v551_v15 = vpack.c.b16 %v550_v3, %v550_v3 }
 0xd6b   :  { %v276_v16 = vpop.permute.xlu1 %275 }
 0xd6c   :  { %279 = vst.msk [vmem:[#allocation3 + $0x4] sm:$0xf] %vm211_vm10, %v276_v16  ;;  %552 = vrot.lane.b32.xlu2 %v551_v15, %s1654_s24 }
 0xd73   :  { %v1500_v17 = vld [vmem:[#allocation3] sm:$0xff] }
 0xd74   :  { %1455 = vmatmul.msk.bf16.vlgmr.msra.gmra.mxu3 %vm85_vm0, %v1500_v17 }
 0xdc6   :  { %v553_v20 = vpop.permute.xlu2 %552 }
 0xdc7   :  { %1427 = vmatmul.msk.bf16.vlgmr.msra.gmra.mxu1 %vm85_vm0, %v553_v20 }
 0xdc8   :  { %1000 = vmatpush.bf16.msra.mxu1 %v1839_v18 }
 0xdcc   :  { %1001 = vmatpush.bf16.msra.mxu1 %v1845_v19 }
 0xdd7   :  { %804 = vmatmul.bf16.vlgmr.msrb.gmra.mxu1 %v1652_v2 }
 0xdd8   :  { %1198 = vmatpush.bf16.msrb.mxu1 %v1839_v18 }
 0xddc   :  { %1199 = vmatpush.bf16.msrb.mxu1 %v1845_v19 }
 0xdf7   :  { %v751_v28 = vpop.f32.mrf.mxu3 }
 0xdf8   :  { %v752_v29 = vadd.f32 %v1865_v27, %v751_v28 }
 0xdff   :  { %v753_v28 = vpop.f32.mrf.mxu3 }
 0xe44   :  { %v566_v23 = vpop.f32.mrf.mxu1 }
 0xe45   :  { %v570_v24 = vadd.f32 %v566_v23, %v123_v22 }
 0xe47   :  { %1567 = vtanh.f32 %v570_v24  ;;  %v1428_v33 = vmul.f32 -1.442695, %v570_v24 }
 0xe4c   :  { %v568_v25 = vpop.f32.mrf.mxu1 }
 0xe4d   :  { %v1568_v26 = vpop.eup %1567 }
 0xe4e   :  { %593 = vrot.lane.b32.xlu2 %v1568_v26, %s1653_s23 }
 0xe54   :  { %v805_v30 = vpop.f32.mrf.mxu1 }
 0xe55   :  { %v809_v31 = vadd.f32 %v805_v30, %v752_v29  ;;  %v754_v29 = vadd.f32 %v1865_v27, %v753_v28 }
 0xe57   :  { %1569 = vtanh.f32 %v809_v31  ;;  %v1467_v45 = vmul.f32 -1.442695, %v809_v31 }
 0xe58   :  { %1571 = vpow2.f32 %v1428_v33 }
 0xe5c   :  { %v807_v32 = vpop.f32.mrf.mxu1 }
 0xe5d   :  { %v1570_v6 = vpop.eup %1569 }
 0xe5e   :  { %832 = vrot.lane.b32.xlu0 %v1570_v6, %s1653_s23  ;;  %v1572_v35 = vpop.eup %1571 }
 0xe5f   :  { %v574_v37 = vadd.f32 1.0, %v1572_v35 }
 0xe61   :  { %1573 = vrcp.f32 %v574_v37  ;;  %v586_v44 = vand.u32 2147483648, %v574_v37  ;;  %vm580_vm12 = vweird.f32 %v574_v37  ;;  %v584_v46 = vand.u32 2147483647, %v574_v37 }
 0xe62   :  { %1575 = vpow2.f32 %v1467_v45 }
 0xe63   :  { %v587_v48 = vor.u32 1.1754944e-38, %v586_v44  ;;  %vm585_vm14 = vcmp.eq.f32.partialorder %v584_v46, 8.507059e+37 }
 0xe67   :  { %v1574_v38 = vpop.eup %1573 }
 0xe68   :  { %v576_v39 = vmul.f32 %v1574_v38, %v574_v37  ;;  %vm581_vm11 = vweird.f32 %v1574_v38  ;;  %v1576_v52 = vpop.eup %1575 }
 0xe69   :  { %vm582_vm13 = vmor %vm580_vm12, %vm581_vm11  ;;  %v813_v53 = vadd.f32 1.0, %v1576_v52 }
 0xe6a   :  { %v577_v41 = vsub.f32 1.0, %v576_v39 }
 0xe6b   :  { %1577 = vrcp.f32 %v813_v53  ;;  %v825_v59 = vand.u32 2147483648, %v813_v53  ;;  %vm819_vm1 = vweird.f32 %v813_v53  ;;  %v823_v60 = vand.u32 2147483647, %v813_v53 }
 0xe6c   :  { %v578_v42 = vmul.f32 %v1574_v38, %v577_v41 }
 0xe6d   :  { %v826_v62 = vor.u32 1.1754944e-38, %v825_v59  ;;  %vm824_vm3 = vcmp.eq.f32.partialorder %v823_v60, 8.507059e+37 }
 0xe6e   :  { %v579_v43 = vadd.f32 %v1574_v38, %v578_v42 }
 0xe70   :  { %v583_v47 = vsel %vm582_vm13, %v1574_v38, %v579_v43 }
 0xe71   :  { %v588_v50 = vsel %vm585_vm14, %v587_v48, %v583_v47  ;;  %v1578_v54 = vpop.eup %1577 }
 0xe72   :  { %v815_v55 = vmul.f32 %v1578_v54, %v813_v53  ;;  %vm820_vm15 = vweird.f32 %v1578_v54  ;;  %v591_v4 = vmul.f32 %v588_v50, %v1813_v5 }
 0xe73   :  { %vm821_vm2 = vmor %vm819_vm1, %vm820_vm15 }
 0xe74   :  { %v816_v56 = vsub.f32 1.0, %v815_v55 }
 0xe76   :  { %v817_v57 = vmul.f32 %v1578_v54, %v816_v56 }
 0xe78   :  { %v818_v58 = vadd.f32 %v1578_v54, %v817_v57 }
 0xe7a   :  { %v822_v61 = vsel %vm821_vm2, %v1578_v54, %v818_v58  ;;  %v1911_v58 = vpop.f32.mrf.mxu0 }
 0xe7b   :  { %v827_v0 = vsel %vm824_vm3, %v826_v62, %v822_v61 }
 0xe7c   :  { %v830_v10 = vmul.f32 0.0, %v827_v0 }
 0xea8   :  { %v594_v49 = vpop.permute.xlu2 %593 }
 0xea9   :  { %v596_v51 = vmul.f32 %v594_v49, %v588_v50 }
 0xeab   :  { %598 = vrot.lane.b32.xlu1 %v596_v51, %s1653_s23 }
 0xed0   :  { %v833_v63 = vpop.permute.xlu0 %832 }
 0xed1   :  { %v835_v1 = vmul.f32 %v833_v63, %v827_v0 }
 0xed3   :  { %837 = vrot.lane.b32.xlu2 %v835_v1, %s1653_s23 }
 0xf1d   :  { %v599_v8 = vpop.permute.xlu1 %598 }
 0xf1e   :  { %v1872_v9 = vadd.f32 %v599_v8, %v591_v4 }
 0xf20   :  { %1579 = vtanh.f32 %v1872_v9 }
 0xf26   :  { %v1580_v34 = vpop.eup %1579 }
 0xf27   :  { %604 = vrot.lane.b32.xlu0 %v1580_v34, %s1653_s23 }
 0xf2d   :  { %v838_v11 = vpop.permute.xlu2 %837 }
 0xf2e   :  { %v840_v12 = vadd.f32 %v838_v11, %v830_v10 }
 0xf30   :  { %1581 = vtanh.f32 %v840_v12 }
 0xf36   :  { %v1582_v13 = vpop.eup %1581 }
 0xf37   :  { %843 = vrot.lane.b32.xlu1 %v1582_v13, %s1653_s23 }
 0xf99   :  { %v605_v3 = vpop.permute.xlu0 %604 }
 0xf9a   :  { %v607_v15 = vmul.f32 %v605_v3, %v588_v50 }
 0xf9c   :  { %v1877_v16 = vpack.c.bf16 %v607_v15, %v607_v15 }
 0xf9e   :  { %v617_v5 = vunpack.c.l.b16 %v1877_v16 }
 0xfa0   :  { %v618_v17 = vpack.c.b16 %v617_v5, %v617_v5 }
 0xfa2   :  { %619 = vrot.lane.b32.xlu2 %v618_v17, %s1654_s24 }
 0xfa9   :  { %v844_v20 = vpop.permute.xlu1 %843 }
 0xfaa   :  { %v1881_v21 = vmul.f32 %v844_v20, %v827_v0 }
 0xfac   :  { %v855_v22 = vpack.c.bf16 %v1881_v21, %v1881_v21 }
 0xfae   :  { %857 = vrot.lane.b32.xlu0 %v855_v22, %s1654_s24 }
 0xffc   :  { %v620_v23 = vpop.permute.xlu2 %619 }
 0xffd   :  { %1429 = vmatmul.msk.bf16.vlgmr.msra.gmra.mxu2 %vm85_vm0, %v620_v23 }
 0xffe   :  { %1066 = vmatpush.bf16.msra.mxu2 %v1839_v18 }
0x1002   :  { %1067 = vmatpush.bf16.msra.mxu2 %v1845_v19 }
0x1020   :  { %v858_v24 = vpop.permute.xlu0 %857 }
0x1021   :  { %1468 = vmatmul.msk.bf16.vlgmr.msrb.gmra.mxu2 %vm85_vm0, %v858_v24 }
0x1022   :  { %1264 = vmatpush.bf16.msrb.mxu2 %v1839_v18 }
0x1026   :  { %1265 = vmatpush.bf16.msrb.mxu2 %v1845_v19 }
0x1080   :  { %v1892_v25 = vpop.f32.mrf.mxu2 }
0x1088   :  { %v635_v26 = vpop.f32.mrf.mxu2 }
0x10a4   :  { %v871_v30 = vpop.f32.mrf.mxu2 }
0x10a5   :  { %v875_v31 = vadd.f32 %v871_v30, %v754_v29 }
0x10a7   :  { %1583 = vtanh.f32 %v875_v31  ;;  %v1469_v33 = vmul.f32 -1.442695, %v875_v31 }
0x10a9   :  { %1585 = vpow2.f32 %v1469_v33 }
0x10ac   :  { %v873_v32 = vpop.f32.mrf.mxu2 }
0x10ad   :  { %v1584_v6 = vpop.eup %1583 }
0x10ae   :  { %898 = vrot.lane.b32.xlu1 %v1584_v6, %s1653_s23 }
0x10af   :  { %v1586_v18 = vpop.eup %1585 }
0x10b0   :  { %v879_v19 = vadd.f32 1.0, %v1586_v18 }
0x10b2   :  { %1587 = vrcp.f32 %v879_v19  ;;  %v891_v42 = vand.u32 2147483648, %v879_v19  ;;  %vm885_vm5 = vweird.f32 %v879_v19  ;;  %v889_v43 = vand.u32 2147483647, %v879_v19 }
0x10b4   :  { %v892_v45 = vor.u32 1.1754944e-38, %v891_v42  ;;  %vm890_vm7 = vcmp.eq.f32.partialorder %v889_v43, 8.507059e+37 }
0x10b6   :  { %342 = vrot.lane.b32.xlu1 %v1781_v36, %s1654_s24 }
0x10b8   :  { %v1588_v35 = vpop.eup %1587 }
0x10b9   :  { %v881_v37 = vmul.f32 %v1588_v35, %v879_v19  ;;  %vm886_vm4 = vweird.f32 %v1588_v35 }
0x10ba   :  { %vm887_vm6 = vmor %vm885_vm5, %vm886_vm4 }
0x10bb   :  { %v882_v38 = vsub.f32 1.0, %v881_v37 }
0x10bd   :  { %v883_v39 = vmul.f32 %v1588_v35, %v882_v38 }
0x10bf   :  { %v884_v41 = vadd.f32 %v1588_v35, %v883_v39 }
0x10c1   :  { %v888_v44 = vsel %vm887_vm6, %v1588_v35, %v884_v41 }
0x10c2   :  { %v893_v36 = vsel %vm890_vm7, %v892_v45, %v888_v44 }
0x10c3   :  { %v896_v49 = vmul.f32 %v893_v36, %v840_v12 }
0x1120   :  { %v899_v46 = vpop.permute.xlu1 %898 }
0x1121   :  { %v901_v47 = vmul.f32 %v899_v46, %v893_v36 }
0x1123   :  { %903 = vrot.lane.b32.xlu2 %v901_v47, %s1653_s23 }
0x1128   :  { %v343_v48 = vpop.permute.xlu1 %342 }
0x1129   :  { %346 = vst.msk [vmem:[#allocation3 + $0x8] sm:$0xf] %vm211_vm10, %v343_v48 }
0x112b   :  { %409 = vrot.lane.b32.xlu2 %v1794_v7, %s1654_s24 }
0x117d   :  { %v904_v50 = vpop.permute.xlu2 %903 }
0x117e   :  { %v906_v51 = vadd.f32 %v904_v50, %v896_v49 }
0x1180   :  { %1589 = vtanh.f32 %v906_v51 }
0x1185   :  { %v410_v52 = vpop.permute.xlu2 %409 }
0x1186   :  { %v1590_v53 = vpop.eup %1589  ;;  %413 = vst.msk [vmem:[#allocation3 + $0xc] sm:$0xf] %vm211_vm10, %v410_v52 }
0x1187   :  { %909 = vrot.lane.b32.xlu0 %v1590_v53, %s1653_s23 }
0x118d   :  { %v1501_v54 = vld [vmem:[#allocation3 + $0x8] sm:$0xff] }
0x118e   :  { %1456 = vmatmul.msk.bf16.gmra.mxu3 %vm85_vm0, %v1501_v54 }
0x11f9   :  { %v910_v55 = vpop.permute.xlu0 %909 }
0x11fa   :  { %v1905_v56 = vmul.f32 %v910_v55, %v893_v36 }
0x11fc   :  { %v921_v57 = vpack.c.bf16 %v1905_v56, %v1905_v56 }
0x11fe   :  { %923 = vrot.lane.b32.xlu0 %v921_v57, %s1654_s24 }
0x1211   :  { %v756_v59 = vpop.f32.mrf.mxu3 }
0x1212   :  { %v757_v60 = vadd.f32 %v1865_v27, %v756_v59 }
0x1219   :  { %v758_v33 = vpop.f32.mrf.mxu3 }
0x121a   :  { %v759_v18 = vadd.f32 %v1865_v27, %v758_v33 }
0x1270   :  { %v924_v7 = vpop.permute.xlu0 %923 }
0x1271   :  { %1470 = vmatmul.msk.bf16.vlgmr.msrb.gmra.mxu0 %vm85_vm0, %v924_v7 }
0x12ee   :  { %v937_v61 = vpop.f32.mrf.mxu0 }
0x12ef   :  { %v941_v62 = vadd.f32 %v937_v61, %v757_v60 }
0x12f1   :  { %1591 = vtanh.f32 %v941_v62  ;;  %v1471_v1 = vmul.f32 -1.442695, %v941_v62 }
0x12f3   :  { %1593 = vpow2.f32 %v1471_v1 }
0x12f6   :  { %v939_v63 = vpop.f32.mrf.mxu0 }
0x12f7   :  { %v1592_v0 = vpop.eup %1591 }
0x12f8   :  { %964 = vrot.lane.b32.xlu1 %v1592_v0, %s1653_s23 }
0x12f9   :  { %v1594_v4 = vpop.eup %1593 }
0x12fa   :  { %v945_v8 = vadd.f32 1.0, %v1594_v4 }
0x12fc   :  { %1595 = vrcp.f32 %v945_v8  ;;  %v957_v3 = vand.u32 2147483648, %v945_v8  ;;  %vm951_vm9 = vweird.f32 %v945_v8  ;;  %v955_v15 = vand.u32 2147483647, %v945_v8 }
0x12fe   :  { %v958_v17 = vor.u32 1.1754944e-38, %v957_v3  ;;  %vm956_vm12 = vcmp.eq.f32.partialorder %v955_v15, 8.507059e+37 }
0x1302   :  { %v1596_v34 = vpop.eup %1595 }
0x1303   :  { %v947_v10 = vmul.f32 %v1596_v34, %v945_v8  ;;  %vm952_vm8 = vweird.f32 %v1596_v34 }
0x1304   :  { %vm953_vm11 = vmor %vm951_vm9, %vm952_vm8 }
0x1305   :  { %v948_v11 = vsub.f32 1.0, %v947_v10 }
0x1307   :  { %v949_v12 = vmul.f32 %v1596_v34, %v948_v11 }
0x1309   :  { %v950_v13 = vadd.f32 %v1596_v34, %v949_v12 }
0x130b   :  { %v954_v5 = vsel %vm953_vm11, %v1596_v34, %v950_v13 }
0x130c   :  { %v959_v22 = vsel %vm956_vm12, %v958_v17, %v954_v5 }
0x130d   :  { %v962_v24 = vmul.f32 %v959_v22, %v906_v51 }
0x136a   :  { %v965_v20 = vpop.permute.xlu1 %964 }
0x136b   :  { %v967_v23 = vmul.f32 %v965_v20, %v959_v22 }
0x136d   :  { %969 = vrot.lane.b32.xlu2 %v967_v23, %s1653_s23 }
0x13c7   :  { %v970_v26 = vpop.permute.xlu2 %969 }
0x13c8   :  { %v972_v28 = vadd.f32 %v970_v26, %v962_v24  ;;  %v1651_v26 = vld [vmem:[%s2031_s4] ss:$0 sm:$0xff] }
0x13ca   :  { %1597 = vtanh.f32 %v972_v28 }
0x13d0   :  { %v1598_v29 = vpop.eup %1597 }
0x13d1   :  { %975 = vrot.lane.b32.xlu0 %v1598_v29, %s1653_s23 }
0x1443   :  { %v976_v30 = vpop.permute.xlu0 %975 }
0x1444   :  { %v1917_v31 = vmul.f32 %v976_v30, %v959_v22 }
0x1446   :  { %v987_v32 = vpack.c.bf16 %v1917_v31, %v1917_v31 }
0x1448   :  { %989 = vrot.lane.b32.xlu1 %v987_v32, %s1654_s24 }
0x14ba   :  { %v990_v6 = vpop.permute.xlu1 %989 }
0x14bb   :  { %1472 = vmatmul.msk.bf16.vlgmr.msra.gmra.mxu1 %vm85_vm0, %v990_v6 }
0x1538   :  { %v1003_v19 = vpop.f32.mrf.mxu1 }
0x1539   :  { %v1007_v35 = vadd.f32 %v1003_v19, %v759_v18 }
0x153b   :  { %1599 = vtanh.f32 %v1007_v35  ;;  %v1473_v39 = vmul.f32 -1.442695, %v1007_v35 }
0x153d   :  { %1601 = vpow2.f32 %v1473_v39 }
0x1540   :  { %v1005_v37 = vpop.f32.mrf.mxu1 }
0x1541   :  { %v1600_v38 = vpop.eup %1599 }
0x1542   :  { %1030 = vrot.lane.b32.xlu2 %v1600_v38, %s1653_s23 }
0x1543   :  { %v1602_v41 = vpop.eup %1601 }
0x1544   :  { %v1011_v42 = vadd.f32 1.0, %v1602_v41 }
0x1546   :  { %1603 = vrcp.f32 %v1011_v42  ;;  %v1023_v47 = vand.u32 2147483648, %v1011_v42  ;;  %vm1017_vm14 = vweird.f32 %v1011_v42  ;;  %v1021_v48 = vand.u32 2147483647, %v1011_v42 }
0x1548   :  { %v1024_v50 = vor.u32 1.1754944e-38, %v1023_v47  ;;  %vm1022_vm1 = vcmp.eq.f32.partialorder %v1021_v48, 8.507059e+37 }
0x154a   :  { %476 = vrot.lane.b32.xlu2 %v1803_v40, %s1654_s24 }
0x154c   :  { %v1604_v43 = vpop.eup %1603 }
0x154d   :  { %v1013_v44 = vmul.f32 %v1604_v43, %v1011_v42  ;;  %vm1018_vm13 = vweird.f32 %v1604_v43 }
0x154e   :  { %vm1019_vm15 = vmor %vm1017_vm14, %vm1018_vm13 }
0x154f   :  { %v1014_v45 = vsub.f32 1.0, %v1013_v44 }
0x1551   :  { %v1015_v46 = vmul.f32 %v1604_v43, %v1014_v45 }
0x1553   :  { %v1016_v36 = vadd.f32 %v1604_v43, %v1015_v46 }
0x1555   :  { %v1020_v49 = vsel %vm1019_vm15, %v1604_v43, %v1016_v36 }
0x1556   :  { %v1025_v40 = vsel %vm1022_vm1, %v1024_v50, %v1020_v49 }
0x1557   :  { %v1028_v54 = vmul.f32 %v1025_v40, %v972_v28  ;;  %v125_v28 = vadd.f32 %v1651_v26, %v1911_v58 }
0x1559   :  { %v637_v30 = vadd.f32 %v1892_v25, %v125_v28 }
0x155b   :  { %v1430_v38 = vmul.f32 -1.442695, %v637_v30 }
0x159c   :  { %v1031_v51 = vpop.permute.xlu2 %1030 }
0x159d   :  { %v1033_v52 = vmul.f32 %v1031_v51, %v1025_v40 }
0x159f   :  { %1035 = vrot.lane.b32.xlu0 %v1033_v52, %s1653_s23 }
0x15a4   :  { %v477_v53 = vpop.permute.xlu2 %476 }
0x15a5   :  { %480 = vst.msk [vmem:[#allocation3 + $0x10] sm:$0xf] %vm211_vm10, %v477_v53 }
0x15a7   :  { %543 = vrot.lane.b32.xlu0 %v1830_v14, %s1654_s24 }
0x1611   :  { %v1036_v55 = vpop.permute.xlu0 %1035 }
0x1612   :  { %v1038_v57 = vadd.f32 %v1036_v55, %v1028_v54 }
0x1614   :  { %1605 = vtanh.f32 %v1038_v57 }
0x1619   :  { %v544_v7 = vpop.permute.xlu0 %543 }
0x161a   :  { %v1606_v59 = vpop.eup %1605  ;;  %547 = vst.msk [vmem:[#allocation3 + $0x14] sm:$0xf] %vm211_vm10, %v544_v7 }
0x161b   :  { %1041 = vrot.lane.b32.xlu1 %v1606_v59, %s1653_s23 }
0x1621   :  { %v1502_v60 = vld [vmem:[#allocation3 + $0x10] sm:$0xff] }
0x1622   :  { %1457 = vmatmul.msk.bf16.gmra.mxu3 %vm85_vm0, %v1502_v60 }
0x168d   :  { %v1042_v61 = vpop.permute.xlu1 %1041 }
0x168e   :  { %v1934_v62 = vmul.f32 %v1042_v61, %v1025_v40 }
0x1690   :  { %v1053_v63 = vpack.c.bf16 %v1934_v62, %v1934_v62 }
0x1692   :  { %1055 = vrot.lane.b32.xlu1 %v1053_v63, %s1654_s24 }
0x16a5   :  { %v761_v0 = vpop.f32.mrf.mxu3 }
0x16a6   :  { %v762_v1 = vadd.f32 %v1865_v27, %v761_v0 }
0x16ad   :  { %v763_v55 = vpop.f32.mrf.mxu3 }
0x1704   :  { %v1056_v14 = vpop.permute.xlu1 %1055 }
0x1705   :  { %1474 = vmatmul.msk.bf16.vlgmr.msra.gmra.mxu2 %vm85_vm0, %v1056_v14 }
0x1788   :  { %v1069_v4 = vpop.f32.mrf.mxu2 }
0x1789   :  { %v1073_v8 = vadd.f32 %v1069_v4, %v762_v1 }
0x178b   :  { %1607 = vtanh.f32 %v1073_v8  ;;  %v1475_v11 = vmul.f32 -1.442695, %v1073_v8 }
0x178d   :  { %1609 = vpow2.f32 %v1475_v11 }
0x1790   :  { %v1071_v34 = vpop.f32.mrf.mxu2 }
0x1791   :  { %v1608_v10 = vpop.eup %1607 }
0x1792   :  { %1096 = vrot.lane.b32.xlu2 %v1608_v10, %s1653_s23 }
0x1793   :  { %v1610_v12 = vpop.eup %1609 }
0x1794   :  { %v1077_v13 = vadd.f32 1.0, %v1610_v12 }
0x1796   :  { %1611 = vrcp.f32 %v1077_v13  ;;  %v1089_v22 = vand.u32 2147483648, %v1077_v13  ;;  %vm1083_vm3 = vweird.f32 %v1077_v13  ;;  %v1087_v23 = vand.u32 2147483647, %v1077_v13 }
0x1797   :  { %1613 = vtanh.f32 %v637_v30 }
0x1798   :  { %v1090_v29 = vor.u32 1.1754944e-38, %v1089_v22  ;;  %vm1088_vm5 = vcmp.eq.f32.partialorder %v1087_v23, 8.507059e+37 }
0x179c   :  { %v1612_v3 = vpop.eup %1611 }
0x179d   :  { %v1079_v15 = vmul.f32 %v1612_v3, %v1077_v13  ;;  %vm1084_vm2 = vweird.f32 %v1612_v3  ;;  %v1614_v18 = vpop.eup %1613 }
0x179e   :  { %vm1085_vm4 = vmor %vm1083_vm3, %vm1084_vm2 }
0x179f   :  { %v1080_v5 = vsub.f32 1.0, %v1079_v15 }
0x17a1   :  { %v1081_v17 = vmul.f32 %v1612_v3, %v1080_v5 }
0x17a3   :  { %v1082_v20 = vadd.f32 %v1612_v3, %v1081_v17 }
0x17a5   :  { %v1086_v24 = vsel %vm1085_vm4, %v1612_v3, %v1082_v20 }
0x17a6   :  { %v1091_v6 = vsel %vm1088_vm5, %v1090_v29, %v1086_v24 }
0x17a7   :  { %v1094_v19 = vmul.f32 %v1091_v6, %v1038_v57  ;;  %v764_v57 = vadd.f32 %v1865_v27, %v763_v55 }
0x17ec   :  { %v1097_v32 = vpop.permute.xlu2 %1096 }
0x17ed   :  { %v1099_v33 = vmul.f32 %v1097_v32, %v1091_v6 }
0x17ef   :  { %1101 = vrot.lane.b32.xlu0 %v1099_v33, %s1653_s23 }
0x17f7   :  { %660 = vrot.lane.b32.xlu0 %v1614_v18, %s1653_s23 }
0x1861   :  { %v1102_v35 = vpop.permute.xlu0 %1101 }
0x1862   :  { %v1949_v37 = vadd.f32 %v1102_v35, %v1094_v19 }
0x1864   :  { %1615 = vtanh.f32 %v1949_v37 }
0x1865   :  { %1617 = vpow2.f32 %v1430_v38 }
0x1869   :  { %v661_v40 = vpop.permute.xlu0 %660 }
0x186a   :  { %v1616_v58 = vpop.eup %1615 }
0x186b   :  { %1107 = vrot.lane.b32.xlu1 %v1616_v58, %s1653_s23  ;;  %v1618_v25 = vpop.eup %1617 }
0x186c   :  { %v641_v39 = vadd.f32 1.0, %v1618_v25 }
0x186e   :  { %1619 = vrcp.f32 %v641_v39  ;;  %v653_v48 = vand.u32 2147483648, %v641_v39  ;;  %vm647_vm7 = vweird.f32 %v641_v39  ;;  %v651_v49 = vand.u32 2147483647, %v641_v39 }
0x1870   :  { %v654_v51 = vor.u32 1.1754944e-38, %v653_v48  ;;  %vm652_vm9 = vcmp.eq.f32.partialorder %v651_v49, 8.507059e+37 }
0x1874   :  { %v1620_v41 = vpop.eup %1619 }
0x1875   :  { %v643_v42 = vmul.f32 %v1620_v41, %v641_v39  ;;  %vm648_vm6 = vweird.f32 %v1620_v41 }
0x1876   :  { %vm649_vm8 = vmor %vm647_vm7, %vm648_vm6 }
0x1877   :  { %v644_v43 = vsub.f32 1.0, %v643_v42 }
0x1879   :  { %v645_v44 = vmul.f32 %v1620_v41, %v644_v43 }
0x187b   :  { %v646_v36 = vadd.f32 %v1620_v41, %v645_v44 }
0x187d   :  { %v650_v50 = vsel %vm649_vm8, %v1620_v41, %v646_v36 }
0x187e   :  { %v655_v52 = vsel %vm652_vm9, %v654_v51, %v650_v50 }
0x187f   :  { %v663_v53 = vmul.f32 %v661_v40, %v655_v52  ;;  %v658_v61 = vmul.f32 %v655_v52, %v1872_v9 }
0x18dd   :  { %v1108_v45 = vpop.permute.xlu1 %1107 }
0x18de   :  { %v1953_v46 = vmul.f32 %v1108_v45, %v1091_v6 }
0x18e0   :  { %v1119_v47 = vpack.c.bf16 %v1953_v46, %v1953_v46 }
0x18e2   :  { %1121 = vrot.lane.b32.xlu2 %v1119_v47, %s1654_s24 }
0x18ea   :  { %665 = vrot.lane.b32.xlu2 %v663_v53, %s1653_s23 }
0x193c   :  { %v1122_v54 = vpop.permute.xlu2 %1121 }
0x193d   :  { %1476 = vmatmul.msk.bf16.vlgmr.msra.gmra.mxu0 %vm85_vm0, %v1122_v54 }
0x1944   :  { %v666_v60 = vpop.permute.xlu2 %665 }
0x1945   :  { %v668_v63 = vadd.f32 %v666_v60, %v658_v61 }
0x19ba   :  { %v1135_v7 = vpop.f32.mrf.mxu0 }
0x19bb   :  { %v1139_v59 = vadd.f32 %v1135_v7, %v764_v57 }
0x19bd   :  { %1621 = vtanh.f32 %v1139_v59  ;;  %v1477_v4 = vmul.f32 -1.442695, %v1139_v59 }
0x19be   :  { %1623 = vtanh.f32 %v668_v63 }
0x19bf   :  { %1625 = vpow2.f32 %v1477_v4  ;;  %v36_v4 = vld [vmem:[%s2036_s0] sm:$0xff] }
0x19c0   :  { %vm847_vm3 = vcmp.eq.s32.totalorder %v36_v4, 1  ;;  %vm1177_vm4 = vcmp.eq.s32.totalorder %v36_v4, 6  ;;  %vm913_vm5 = vcmp.eq.s32.totalorder %v36_v4, 2  ;;  %vm1045_vm6 = vcmp.eq.s32.totalorder %v36_v4, 4 }
0x19c1   :  { %vm1243_vm7 = vcmp.eq.s32.totalorder %v36_v4, 7  ;;  %vm1309_vm8 = vcmp.eq.s32.totalorder %v36_v4, 8 }
0x19c2   :  { %v1137_v14 = vpop.f32.mrf.mxu0 }
0x19c3   :  { %v1622_v0 = vpop.eup %1621 }
0x19c4   :  { %1162 = vrot.lane.b32.xlu1 %v1622_v0, %s1653_s23  ;;  %v1624_v1 = vpop.eup %1623 }
0x19c5   :  { %v1626_v8 = vpop.eup %1625 }
0x19c6   :  { %v1143_v34 = vadd.f32 1.0, %v1626_v8  ;;  %v848_v8 = vsel %vm847_vm3, 1, %v1652_v2 }
0x19c8   :  { %1627 = vrcp.f32 %v1143_v34  ;;  %v1155_v9 = vand.u32 2147483648, %v1143_v34  ;;  %vm1149_vm12 = vweird.f32 %v1143_v34  ;;  %v1153_v15 = vand.u32 2147483647, %v1143_v34 }
0x19ca   :  { %v1156_v17 = vor.u32 1.1754944e-38, %v1155_v9  ;;  %vm1154_vm14 = vcmp.eq.f32.partialorder %v1153_v15, 8.507059e+37 }
0x19cc   :  { %671 = vrot.lane.b32.xlu1 %v1624_v1, %s1653_s23 }
0x19ce   :  { %v1628_v10 = vpop.eup %1627 }
0x19cf   :  { %v1145_v11 = vmul.f32 %v1628_v10, %v1143_v34  ;;  %vm1150_vm11 = vweird.f32 %v1628_v10 }
0x19d0   :  { %vm1151_vm13 = vmor %vm1149_vm12, %vm1150_vm11 }
0x19d1   :  { %v1146_v12 = vsub.f32 1.0, %v1145_v11 }
0x19d3   :  { %v1147_v13 = vmul.f32 %v1628_v10, %v1146_v12 }
0x19d5   :  { %v1148_v3 = vadd.f32 %v1628_v10, %v1147_v13 }
0x19d7   :  { %v1152_v5 = vsel %vm1151_vm13, %v1628_v10, %v1148_v3  ;;  %v1178_v10 = vsel %vm1177_vm4, 1, %v1652_v2 }
0x19d8   :  { %v1157_v22 = vsel %vm1154_vm14, %v1156_v17, %v1152_v5  ;;  %v914_v5 = vsel %vm913_vm5, 1, %v1652_v2  ;;  %v1046_v17 = vsel %vm1045_vm6, 1, %v1652_v2  ;;  %vm979_vm14 = vcmp.eq.s32.totalorder %v36_v4, 3 }
0x19d9   :  { %v1160_v29 = vmul.f32 %v1157_v22, %v1949_v37 }
0x1a36   :  { %v1163_v20 = vpop.permute.xlu1 %1162 }
0x1a37   :  { %v1165_v23 = vmul.f32 %v1163_v20, %v1157_v22  ;;  %v1244_v20 = vsel %vm1243_vm7, 1, %v1652_v2 }
0x1a39   :  { %1167 = vrot.lane.b32.xlu0 %v1165_v23, %s1653_s23 }
0x1a3e   :  { %v672_v24 = vpop.permute.xlu1 %671 }
0x1a3f   :  { %v674_v26 = vmul.f32 %v672_v24, %v655_v52 }
0x1a41   :  { %v675_v28 = vpack.c.bf16 %v674_v26, %v674_v26  ;;  %610 = vrot.lane.b32.xlu0 %v1877_v16, %s1654_s24 }
0x1a43   :  { %677 = vrot.lane.b32.xlu1 %v675_v28, %s1654_s24 }
0x1aab   :  { %v1168_v30 = vpop.permute.xlu0 %1167 }
0x1aac   :  { %v1170_v32 = vadd.f32 %v1168_v30, %v1160_v29  ;;  %v1310_v29 = vsel %vm1309_vm8, 1, %v1652_v2 }
0x1aae   :  { %1629 = vtanh.f32 %v1170_v32 }
0x1ab3   :  { %v611_v6 = vpop.permute.xlu0 %610 }
0x1ab4   :  { %v1630_v33 = vpop.eup %1629  ;;  %614 = vst.msk [vmem:[#allocation3 + $0x18] sm:$0xf] %vm211_vm10, %v611_v6 }
0x1ab5   :  { %1173 = vrot.lane.b32.xlu2 %v1630_v33, %s1653_s23  ;;  %v678_v18 = vpop.permute.xlu1 %677 }
0x1ab6   :  { %681 = vst.msk [vmem:[#allocation3 + $0x1c] sm:$0xf] %vm211_vm10, %v678_v18 }
0x1abd   :  { %v1503_v19 = vld [vmem:[#allocation3 + $0x18] sm:$0xff] }
0x1abe   :  { %1458 = vmatmul.msk.bf16.gmra.mxu3 %vm85_vm0, %v1503_v19 }
0x1b0f   :  { %v1174_v16 = vpop.permute.xlu2 %1173 }
0x1b10   :  { %v1973_v35 = vmul.f32 %v1174_v16, %v1157_v22 }
0x1b12   :  { %v1185_v37 = vpack.c.bf16 %v1973_v35, %v1973_v35 }
0x1b14   :  { %1187 = vrot.lane.b32.xlu2 %v1185_v37, %s1654_s24 }
0x1b41   :  { %v766_v38 = vpop.f32.mrf.mxu3 }
0x1b42   :  { %v767_v25 = vadd.f32 %v1865_v27, %v766_v38  ;;  %v980_v38 = vsel %vm979_vm14, 1, %v1652_v2 }
0x1b49   :  { %v768_v11 = vpop.f32.mrf.mxu3 }
0x1b4a   :  { %v769_v12 = vadd.f32 %v1865_v27, %v768_v11 }
0x1b6e   :  { %v1188_v58 = vpop.permute.xlu2 %1187 }
0x1b6f   :  { %1478 = vmatmul.msk.bf16.vlgmr.msrb.gmra.mxu1 %vm85_vm0, %v1188_v58 }
0x1bec   :  { %v1201_v39 = vpop.f32.mrf.mxu1 }
0x1bed   :  { %v1205_v41 = vadd.f32 %v1201_v39, %v767_v25 }
0x1bef   :  { %1631 = vtanh.f32 %v1205_v41  ;;  %v1479_v44 = vmul.f32 -1.442695, %v1205_v41 }
0x1bf1   :  { %1633 = vpow2.f32 %v1479_v44  ;;  %v1509_v44 = vld [vmem:[%s2037_s8 + $0x8] sm:$0xff] }
0x1bf2   :  { %1349 = vmatpush.bf16.msrb.mxu0 %v1509_v44 }
0x1bf4   :  { %v1203_v42 = vpop.f32.mrf.mxu1 }
0x1bf5   :  { %v1632_v43 = vpop.eup %1631 }
0x1bf6   :  { %1228 = vrot.lane.b32.xlu0 %v1632_v43, %s1653_s23 }
0x1bf7   :  { %v1634_v45 = vpop.eup %1633 }
0x1bf8   :  { %v1209_v36 = vadd.f32 1.0, %v1634_v45  ;;  %v1508_v45 = vld [vmem:[%s2037_s8] sm:$0xff] }
0x1bf9   :  { %1350 = vmatpush.bf16.msrb.mxu0 %v1508_v45 }
0x1bfa   :  { %1635 = vrcp.f32 %v1209_v36  ;;  %v1221_v40 = vand.u32 2147483648, %v1209_v36  ;;  %vm1215_vm15 = vweird.f32 %v1209_v36  ;;  %v1219_v52 = vand.u32 2147483647, %v1209_v36 }
0x1bfc   :  { %v1222_v54 = vor.u32 1.1754944e-38, %v1221_v40  ;;  %vm1220_vm2 = vcmp.eq.f32.partialorder %v1219_v52, 8.507059e+37 }
0x1c00   :  { %v1636_v47 = vpop.eup %1635 }
0x1c01   :  { %v1211_v48 = vmul.f32 %v1636_v47, %v1209_v36  ;;  %vm1216_vm10 = vweird.f32 %v1636_v47 }
0x1c02   :  { %vm1217_vm1 = vmor %vm1215_vm15, %vm1216_vm10  ;;  %vm1111_vm10 = vcmp.eq.s32.totalorder %v36_v4, 5 }
0x1c03   :  { %v1212_v49 = vsub.f32 1.0, %v1211_v48  ;;  %v1112_v25 = vsel %vm1111_vm10, 1, %v1652_v2 }
0x1c05   :  { %v1213_v50 = vmul.f32 %v1636_v47, %v1212_v49 }
0x1c07   :  { %v1214_v51 = vadd.f32 %v1636_v47, %v1213_v50 }
0x1c09   :  { %v1218_v53 = vsel %vm1217_vm1, %v1636_v47, %v1214_v51 }
0x1c0a   :  { %v1223_v57 = vsel %vm1220_vm2, %v1222_v54, %v1218_v53 }
0x1c0b   :  { %v1226_v59 = vmul.f32 %v1223_v57, %v1170_v32 }
0x1c68   :  { %v1229_v55 = vpop.permute.xlu0 %1228 }
0x1c69   :  { %v1231_v7 = vmul.f32 %v1229_v55, %v1223_v57 }
0x1c6b   :  { %1233 = vrot.lane.b32.xlu1 %v1231_v7, %s1653_s23 }
0x1cdd   :  { %v1234_v60 = vpop.permute.xlu1 %1233 }
0x1cde   :  { %v1982_v61 = vadd.f32 %v1234_v60, %v1226_v59 }
0x1ce0   :  { %1637 = vtanh.f32 %v1982_v61 }
0x1ce6   :  { %v1638_v63 = vpop.eup %1637 }
0x1ce7   :  { %1239 = vrot.lane.b32.xlu2 %v1638_v63, %s1653_s23 }
0x1d41   :  { %v1240_v14 = vpop.permute.xlu2 %1239 }
0x1d42   :  { %v1986_v0 = vmul.f32 %v1240_v14, %v1223_v57 }
0x1d44   :  { %v1251_v1 = vpack.c.bf16 %v1986_v0, %v1986_v0 }
0x1d46   :  { %1253 = vrot.lane.b32.xlu0 %v1251_v1, %s1654_s24 }
0x1d4e   :  { %850 = vperm.xlu0 %1513, %v848_v8  }
0x1d56   :  { %1180 = vperm.xlu0 %1513, %v1178_v10  }
0x1d5e   :  { %1312 = vperm.xlu0 %1513, %v1310_v29  }
0x1db8   :  { %v1254_v34 = vpop.permute.xlu0 %1253 }
0x1db9   :  { %1480 = vmatmul.msk.bf16.vlgmr.msrb.gmra.mxu2 %vm85_vm0, %v1254_v34 }
0x1dc0   :  { %v851_v47 = vpop.permute.xlu0 %850 }
0x1dc1   :  { %vm852_vm15 = vcmp.eq.s32.totalorder %v851_v47, 1 }
0x1dc2   :  { %v853_v49 = vsel %vm852_vm15, %v1881_v21, 0.0 }
0x1dc8   :  { %v1181_v40 = vpop.permute.xlu0 %1180 }
0x1dc9   :  { %vm1182_vm5 = vcmp.eq.s32.totalorder %v1181_v40, 1 }
0x1dd0   :  { %v1313_v7 = vpop.permute.xlu0 %1312 }
0x1dd1   :  { %vm1314_vm7 = vcmp.eq.s32.totalorder %v1313_v7, 1 }
0x1e3c   :  { %v1267_v13 = vpop.f32.mrf.mxu2 }
0x1e3d   :  { %v1271_v3 = vadd.f32 %v1267_v13, %v769_v12 }
0x1e3f   :  { %1639 = vtanh.f32 %v1271_v3  ;;  %v1481_v27 = vmul.f32 -1.442695, %v1271_v3 }
0x1e41   :  { %1641 = vpow2.f32 %v1481_v27 }
0x1e44   :  { %v1269_v9 = vpop.f32.mrf.mxu2 }
0x1e45   :  { %v1640_v15 = vpop.eup %1639 }
0x1e46   :  { %1294 = vrot.lane.b32.xlu1 %v1640_v15, %s1653_s23 }
0x1e47   :  { %v1642_v22 = vpop.eup %1641 }
0x1e48   :  { %v1275_v23 = vadd.f32 1.0, %v1642_v22 }
0x1e4a   :  { %1643 = vrcp.f32 %v1275_v23  ;;  %v1287_v6 = vand.u32 2147483648, %v1275_v23  ;;  %vm1281_vm11 = vweird.f32 %v1275_v23  ;;  %v1285_v33 = vand.u32 2147483647, %v1275_v23 }
0x1e4c   :  { %v1288_v19 = vor.u32 1.1754944e-38, %v1287_v6  ;;  %vm1286_vm13 = vcmp.eq.f32.partialorder %v1285_v33, 8.507059e+37 }
0x1e4e   :  { %916 = vperm.xlu1 %1514, %v914_v5  }
0x1e50   :  { %v1644_v24 = vpop.eup %1643 }
0x1e51   :  { %v1277_v26 = vmul.f32 %v1644_v24, %v1275_v23  ;;  %vm1282_vm9 = vweird.f32 %v1644_v24 }
0x1e52   :  { %vm1283_vm12 = vmor %vm1281_vm11, %vm1282_vm9 }
0x1e53   :  { %v1278_v28 = vsub.f32 1.0, %v1277_v26 }
0x1e55   :  { %v1279_v30 = vmul.f32 %v1644_v24, %v1278_v28 }
0x1e56   :  { %1048 = vperm.xlu1 %1514, %v1046_v17  }
0x1e57   :  { %v1280_v32 = vadd.f32 %v1644_v24, %v1279_v30 }
0x1e59   :  { %v1284_v18 = vsel %vm1283_vm12, %v1644_v24, %v1280_v32 }
0x1e5a   :  { %v1289_v37 = vsel %vm1286_vm13, %v1288_v19, %v1284_v18 }
0x1e5b   :  { %v1292_v39 = vmul.f32 %v1289_v37, %v1982_v61 }
0x1e5e   :  { %1246 = vperm.xlu1 %1514, %v1244_v20  }
0x1eb8   :  { %v1295_v16 = vpop.permute.xlu1 %1294 }
0x1eb9   :  { %v1297_v58 = vmul.f32 %v1295_v16, %v1289_v37 }
0x1ebb   :  { %1299 = vrot.lane.b32.xlu2 %v1297_v58, %s1653_s23 }
0x1ec0   :  { %v917_v36 = vpop.permute.xlu1 %916 }
0x1ec1   :  { %vm918_vm1 = vcmp.eq.s32.totalorder %v917_v36, 1 }
0x1ec2   :  { %v919_v51 = vsel %vm918_vm1, %v1905_v56, %v853_v49 }
0x1ec3   :  { %982 = vperm.xlu2 %1515, %v980_v38  }
0x1ec8   :  { %v1049_v48 = vpop.permute.xlu1 %1048 }
0x1ec9   :  { %vm1050_vm3 = vcmp.eq.s32.totalorder %v1049_v48, 1 }
0x1ecb   :  { %1114 = vperm.xlu2 %1515, %v1112_v25  }
0x1ed0   :  { %v1247_v55 = vpop.permute.xlu1 %1246 }
0x1ed1   :  { %vm1248_vm6 = vcmp.eq.s32.totalorder %v1247_v55, 1 }
0x1f15   :  { %v1300_v41 = vpop.permute.xlu2 %1299 }
0x1f16   :  { %v1302_v42 = vadd.f32 %v1300_v41, %v1292_v39 }
0x1f18   :  { %1645 = vtanh.f32 %v1302_v42 }
0x1f1d   :  { %v983_v2 = vpop.permute.xlu2 %982 }
0x1f1e   :  { %v1646_v43 = vpop.eup %1645  ;;  %vm984_vm2 = vcmp.eq.s32.totalorder %v983_v2, 1 }
0x1f1f   :  { %1305 = vrot.lane.b32.xlu2 %v1646_v43, %s1653_s23  ;;  %v985_v52 = vsel %vm984_vm2, %v1917_v31, %v919_v51 }
0x1f20   :  { %v1051_v53 = vsel %vm1050_vm3, %v1934_v62, %v985_v52  ;;  %v1518_v62 = vld [vmem:[%s2038_s9] ss:$0 sm:$0xff] }
0x1f25   :  { %v1115_v50 = vpop.permute.xlu2 %1114 }
0x1f26   :  { %vm1116_vm4 = vcmp.eq.s32.totalorder %v1115_v50, 1 }
0x1f27   :  { %v1117_v54 = vsel %vm1116_vm4, %v1953_v46, %v1051_v53 }
0x1f28   :  { %v1183_v57 = vsel %vm1182_vm5, %v1973_v35, %v1117_v54 }
0x1f29   :  { %v1249_v60 = vsel %vm1248_vm6, %v1986_v0, %v1183_v57 }
0x1f79   :  { %v1306_v59 = vpop.permute.xlu2 %1305 }
0x1f7a   :  { %v1308_v21 = vmul.f32 %v1306_v59, %v1289_v37 }
0x1f7c   :  { %v1315_v56 = vsel %vm1314_vm7, %v1308_v21, %v1249_v60 }
0x1f7d   :  { %v1316_v61 = vpack.c.bf16 %v1315_v56, %v1315_v56 }
0x1f7f   :  { %1326 = vrot.lane.b32.xlu1 %v1316_v61, %s1654_s24 }
0x1ff1   :  { %v1327_v31 = vpop.permute.xlu1 %1326 }
0x1ff2   :  { %1490 = vmatmul.msk.bf16.vlgmr.msrb.gmra.mxu0 %vm85_vm0, %v1327_v31 }
0x206f   :  { %v1352_v46 = vpop.f32.mrf.mxu0 }
0x2070   :  { %v1353_v35 = vadd.f32 %v1518_v62, %v1352_v46 }
0x2072   :  { %v1491_v63 = vmul.f32 -1.442695, %v1353_v35 }
0x2074   :  { %1647 = vpow2.f32 %v1491_v63 }
0x2077   :  { %v1354_v14 = vpop.f32.mrf.mxu0 }
0x207a   :  { %v1648_v1 = vpop.eup %1647 }
0x207b   :  { %v1359_v4 = vadd.f32 1.0, %v1648_v1 }
0x207d   :  { %1649 = vrcp.f32 %v1359_v4  ;;  %v1371_v10 = vand.u32 2147483648, %v1359_v4  ;;  %v1369_v12 = vand.u32 2147483647, %v1359_v4  ;;  %vm1365_vm0 = vweird.f32 %v1359_v4 }
0x207f   :  { %v1372_v3 = vor.u32 1.1754944e-38, %v1371_v10  ;;  %vm1370_vm11 = vcmp.eq.f32.partialorder %v1369_v12, 8.507059e+37 }
0x2083   :  { %v1650_v0 = vpop.eup %1649 }
0x2084   :  { %v1361_v8 = vmul.f32 %v1650_v0, %v1359_v4  ;;  %vm1366_vm8 = vweird.f32 %v1650_v0 }
0x2085   :  { %vm1367_vm9 = vmor %vm1365_vm0, %vm1366_vm8 }
0x2086   :  { %v1362_v34 = vsub.f32 1.0, %v1361_v8 }
0x2088   :  { %v1363_v11 = vmul.f32 %v1650_v0, %v1362_v34 }
0x208a   :  { %v1364_v13 = vadd.f32 %v1650_v0, %v1363_v11 }
0x208c   :  { %v1368_v9 = vsel %vm1367_vm9, %v1650_v0, %v1364_v13 }
0x208d   :  { %v1373_v15 = vsel %vm1370_vm11, %v1372_v3, %v1368_v9 }
0x208e   :  { %1375 = vst [vmem:[%s2039_s10] sm:$0xff] %v1373_v15 }

</bundles_post_ra>
